<compile_context>
chip_gen: v7x
topology: tpu7x:2x2x1
jax: 0.10.0
libtpu: 0.0.40
codegen_flags: <defaults>
</compile_context>

<pallas_src>
import functools
import math

import numpy as np
import jax
import jax.numpy as jnp
from jax import lax
from jax.experimental import pallas as pl
from jax.experimental.pallas import tpu as pltpu


# GMM decoder heads 2..6: (start_hour, distance, duration, soc_change, stay)
NCS = (7, 3, 5, 6, 3)
NCMAX = max(NCS)
NGMM = len(NCS)


def decoder_layout(n_loc):
    off_cat1 = 2
    off_wl = 2 + n_loc
    off_mu = off_wl + NGMM * NCMAX
    off_ls = off_mu + NGMM * NCMAX
    total = off_ls + NGMM * NCMAX
    out_pad = ((total + 127) // 128) * 128
    return dict(off_cat1=off_cat1, off_wl=off_wl, off_mu=off_mu, off_ls=off_ls,
                total=total, out_pad=out_pad)


def _should_fold_batch():
    # Single-TC chips (v2..v6e): fold the batch into the sublane axis (1 grid
    # step).  Dual-TC v7x: keep grid=(B,) so each sequence runs on its own TC.
    try:
        kind = jax.devices()[0].device_kind.lower()
    except Exception:
        return True
    return "v7" not in kind


# ----------------------------------------------------------------------------
# Fused Pallas kernel: local proj + pos-enc + n_layers encoder layers + decoders
# ----------------------------------------------------------------------------
def _layernorm(x, g, b, eps=1e-5):
    mu = jnp.mean(x, axis=-1, keepdims=True)
    var = jnp.mean((x - mu) ** 2, axis=-1, keepdims=True)
    return (x - mu) * lax.rsqrt(var + eps) * g + b


def _fused_backbone_kernel(x_ref, cond_ref, pos_ref, bias_ref, lw_ref, lb_ref,
                           wq_ref, wk_ref, wv_ref, wo_ref, w1_ref, w2_ref,
                           vecs_ref, b1_ref, wdh_ref, wdc_ref, bdec_ref,
                           o_ref, *, n_layers, n_head, d_model):
    D = d_model
    dh = D // n_head
    f32 = jnp.float32

    x_in = x_ref[...]                                     # (R, x_enclen)

    # local linear projection + positional encoding (kernel prologue)
    h = (jnp.dot(x_in, lw_ref[...], preferred_element_type=f32)
         + lb_ref[...] + pos_ref[...])                    # (R, D) f32

    bias = bias_ref[...]                                  # (R, R) additive causal mask

    # TODO(synk): dropout (p=0.1, training mode) inside attention/FFN/pos-enc is
    #             omitted for determinism (eval-mode semantics).
    for l in range(n_layers):                             # static unroll (L=2)
        vec = vecs_ref[l]                                 # (16, D) f32 small vectors
        # 1/sqrt(dh) already folded into wq/bq at pack time.
        q = jnp.dot(h, wq_ref[l], preferred_element_type=f32) + vec[0:1]
        k = jnp.dot(h, wk_ref[l], preferred_element_type=f32) + vec[1:2]
        v = jnp.dot(h, wv_ref[l], preferred_element_type=f32) + vec[2:3]
        kT = k.T                                          # ONE transpose per layer
        wo = wo_ref[l]                                    # (D, D)

        attn = jnp.zeros_like(h)
        for hd in range(n_head):                          # static unroll
            r0 = hd * dh                                  # dh=8 => sublane-aligned rows
            s = jnp.dot(q[:, r0:r0 + dh], kT[r0:r0 + dh, :],
                        preferred_element_type=f32) + bias
            s = s - jnp.max(s, axis=-1, keepdims=True)
            p = jnp.exp(s)
            p = p * pl.reciprocal(jnp.sum(p, axis=-1, keepdims=True), approx=True)
            oh = jnp.dot(p, v[:, r0:r0 + dh], preferred_element_type=f32)
            attn = attn + jnp.dot(oh, wo[r0:r0 + dh, :], preferred_element_type=f32)
        attn = attn + vec[3:4]                            # bo

        h1 = _layernorm(h + attn, vec[5:6], vec[6:7])
        ff = jnp.maximum(jnp.dot(h1, w1_ref[l], preferred_element_type=f32)
                         + b1_ref[l], 0.0)
        ff = jnp.dot(ff, w2_ref[l], preferred_element_type=f32) + vec[4:5]
        h = _layernorm(h1 + ff, vec[7:8], vec[8:9])

    # fused decoder heads: concat([h, cond_x[:, :6]]) @ W_dec done as two dots,
    # lane-dense 128-wide output slab.
    dec = (jnp.dot(h, wdh_ref[...], preferred_element_type=f32)
           + jnp.dot(cond_ref[...], wdc_ref[...], preferred_element_type=f32)
           + bdec_ref[...])
    o_ref[...] = dec


def fused_backbone(x_init, cond6, packed, cfg, fold_batch):
    B, T, xe = x_init.shape
    D, L = cfg['d_model'], cfg['n_layers']
    out_pad = packed['bdec'].shape[-1]
    rows = B * T if fold_batch else T
    steps = 1 if fold_batch else B
    kern = functools.partial(_fused_backbone_kernel, n_layers=L,
                             n_head=cfg['n_head'], d_model=D)

    def rep(shape):
        zero = (0,) * len(shape)
        return pl.BlockSpec(shape, lambda b, _z=zero: _z)

    x_flat = x_init.reshape(B * T, xe)
    cond_flat = cond6.reshape(B * T, 6)

    flops = 2 * B * T * (xe * D + L * (4 * D * D + 2 * T * D + 8 * D * D)
                         + (D + 6) * out_pad)
    transcendentals = B * T * T * cfg['n_head'] * L + 4 * B * T * L
    bytes_accessed = 4 * (x_flat.size + cond_flat.size + packed['pos'].size
                          + packed['bias'].size + packed['lw'].size
                          + packed['lb'].size + packed['wq'].size
                          + packed['wk'].size + packed['wv'].size
                          + packed['wo'].size + packed['w1'].size
                          + packed['w2'].size + packed['vecs'].size
                          + packed['b1'].size + packed['wdh'].size
                          + packed['wdc'].size + packed['bdec'].size
                          + B * T * out_pad)

    out = pl.pallas_call(
        kern,
        out_shape=jax.ShapeDtypeStruct((B * T, out_pad), jnp.float32),
        grid=(steps,),
        in_specs=[
            pl.BlockSpec((rows, xe), lambda b: (b, 0)),      # x_init rows
            pl.BlockSpec((rows, 6), lambda b: (b, 0)),       # cond_x[:, :, :6]
            rep((rows, D)),                                  # positional encoding
            rep((rows, rows)),                               # additive causal mask
            rep((xe, D)), rep((1, D)),                       # local proj w, b
            rep((L, D, D)), rep((L, D, D)), rep((L, D, D)), rep((L, D, D)),
            rep((L, D, 4 * D)), rep((L, 4 * D, D)),          # FFN weights
            rep((L, 16, D)), rep((L, 1, 4 * D)),             # small vecs, b1
            rep((D, out_pad)), rep((6, out_pad)), rep((1, out_pad)),  # decoders
        ],
        out_specs=pl.BlockSpec((rows, out_pad), lambda b: (b, 0)),
        compiler_params=pltpu.CompilerParams(
            dimension_semantics=("parallel",)),
        cost_estimate=pl.CostEstimate(flops=int(flops),
                                      transcendentals=int(transcendentals),
                                      bytes_accessed=int(bytes_accessed)),
    )(x_flat, cond_flat, packed['pos'], packed['bias'], packed['lw'], packed['lb'],
      packed['wq'], packed['wk'], packed['wv'], packed['wo'],
      packed['w1'], packed['w2'], packed['vecs'], packed['b1'],
      packed['wdh'], packed['wdc'], packed['bdec'])
    return out.reshape(B, T, out_pad)


# ----------------------------------------------------------------------------
# Parameter packing (runs ONCE, outside the jitted step)
# ----------------------------------------------------------------------------
def pack_params(params, cfg, T, B, fold_batch):
    D, L = cfg['d_model'], cfg['n_layers']
    n_loc, n_head = cfg['n_loc'], cfg['n_head']
    dh = D // n_head
    scale = 1.0 / math.sqrt(dh)
    f32 = jnp.float32
    layers = params['layers']

    wq = jnp.stack([lp['wq'] * scale for lp in layers]).astype(f32)   # scale folded
    wk = jnp.stack([lp['wk'] for lp in layers]).astype(f32)
    wv = jnp.stack([lp['wv'] for lp in layers]).astype(f32)
    wo = jnp.stack([lp['wo'] for lp in layers]).astype(f32)
    w1 = jnp.stack([lp['w1'] for lp in layers]).astype(f32)
    w2 = jnp.stack([lp['w2'] for lp in layers]).astype(f32)
    b1 = jnp.stack([lp['b1'][None, :] for lp in layers]).astype(f32)  # (L,1,4D)
    zero = jnp.zeros((D,), f32)
    vecs = jnp.stack([jnp.stack(
        [lp['bq'] * scale, lp['bk'], lp['bv'], lp['bo'], lp['b2'],
         lp['ln1_w'], lp['ln1_b'], lp['ln2_w'], lp['ln2_b']] + [zero] * 7)
        for lp in layers]).astype(f32)                                # (L,16,D)

    rows = B * T if fold_batch else T
    pe = params['pos_table'][:T].astype(f32)
    pos = jnp.tile(pe, (B, 1)) if fold_batch else pe                  # (rows, D)
    r = jnp.arange(rows)
    allowed = r[None, :] <= r[:, None]                                # causal
    if fold_batch:
        allowed = allowed & ((r[None, :] // T) == (r[:, None] // T))  # block-diag
    bias = jnp.where(allowed, 0.0, -1e30).astype(f32)                 # (rows, rows)

    # fused decoder heads, grouped layout [cat0 | cat1 | wl(5x7)|mu(5x7)|logsig(5x7)]
    lay = decoder_layout(n_loc)
    wdh = np.zeros((D, lay['out_pad']), np.float32)
    wdc = np.zeros((6, lay['out_pad']), np.float32)
    bdec = np.zeros((lay['out_pad'],), np.float32)

    def place(i, cols):
        w = np.asarray(params[f'dec{i}_w'], np.float32)   # (D+i, n_out)
        b = np.asarray(params[f'dec{i}_b'], np.float32)
        wdh[:, cols] = w[:D]
        if i > 0:
            wdc[:i, cols] = w[D:D + i]
        bdec[cols] = b

    place(0, np.arange(0, 2))
    place(1, np.arange(lay['off_cat1'], lay['off_cat1'] + n_loc))
    for g, nc in enumerate(NCS):
        cols = np.concatenate([
            np.arange(lay['off_wl'] + g * NCMAX, lay['off_wl'] + g * NCMAX + nc),
            np.arange(lay['off_mu'] + g * NCMAX, lay['off_mu'] + g * NCMAX + nc),
            np.arange(lay['off_ls'] + g * NCMAX, lay['off_ls'] + g * NCMAX + nc)])
        place(2 + g, cols)

    return dict(
        lw=params['local_w'].astype(f32),
        lb=params['local_b'].reshape(1, D).astype(f32),
        pos=pos, bias=bias,
        wq=wq, wk=wk, wv=wv, wo=wo, w1=w1, w2=w2, vecs=vecs, b1=b1,
        wdh=jnp.asarray(wdh), wdc=jnp.asarray(wdc),
        bdec=jnp.asarray(bdec).reshape(1, lay['out_pad']),
    )


# ----------------------------------------------------------------------------
# Model glue (plain JAX)
# ----------------------------------------------------------------------------
def sinusoidal_pe(max_len, d_model):
    pos = jnp.arange(max_len, dtype=jnp.float32)[:, None]
    div = jnp.exp(jnp.arange(0, d_model, 2, dtype=jnp.float32)
                  * (-math.log(10000.0) / d_model))
    pe = jnp.zeros((max_len, d_model), jnp.float32)
    pe = pe.at[:, 0::2].set(jnp.sin(pos * div))
    pe = pe.at[:, 1::2].set(jnp.cos(pos * div))
    return pe


def _gumbel(key, shape):
    u = jax.random.uniform(key, shape, minval=1e-6, maxval=1.0 - 1e-6)
    return -jnp.log(-jnp.log(u))


def categorical_logprob(logits, target_int):
    logp = jax.nn.log_softmax(logits, axis=-1)
    return jnp.take_along_axis(logp, target_int[..., None], axis=-1)[..., 0]


def p0_forward(params, init, key):
    # TODO(synk): Initial_Gen source is not provided; implemented as a small
    #             VAE-style placeholder (encoder -> KL + linear recon MSE).
    #             Left to XLA: the three (2,x) linears would be pure launch
    #             overhead as Pallas kernels.
    h = jax.nn.relu(init @ params['p0_w1'] + params['p0_b1'])
    stats = h @ params['p0_w2'] + params['p0_b2']
    latent = stats.shape[-1] // 2
    mu, logvar = stats[:, :latent], stats[:, latent:]
    z = mu + jnp.exp(0.5 * logvar) * jax.random.normal(key, mu.shape)
    recon = z @ params['p0_w3'] + params['p0_b3']
    kl = -0.5 * jnp.mean(1.0 + logvar - mu ** 2 - jnp.exp(logvar))
    return jnp.mean((recon - init) ** 2) + kl


def constraint_loss(sample, cond_x):
    trip_kind = cond_x[:, :, 0]
    start_soc = cond_x[:, :, 8]
    flag = start_soc - sample[:, :, 5]
    soc_out_0 = jax.nn.relu((1.0 - trip_kind) * flag)
    soc_out_1 = jax.nn.relu(-trip_kind * flag)
    loss_end_soc = jnp.mean(soc_out_0 ** 2 + soc_out_1 ** 2)
    cols = sample[:, :, 2:7]
    out_bound = jax.nn.relu(cols - 1.0)
    in_bound = jax.nn.relu(0.0 - cols)
    loss_con = jnp.mean(out_bound ** 2 + in_bound ** 2)
    return loss_con + loss_end_soc


def forward(params, packed, batch_x, init, key, *, cfg, fold_batch):
    B, T, xd = batch_x.shape
    e, tau = cfg['embed_len'], cfg['tau']
    n_loc = cfg['n_loc']
    keys = jax.random.split(key, 6)

    p0_loss = p0_forward(params, init, keys[0])

    y = batch_x
    seq = jnp.concatenate([batch_x[:, :, :-1],
                           jnp.floor(batch_x[:, :, -1:] * 12.0)], axis=-1)
    x = seq
    cond_x = seq

    emb = params['embed']
    e1 = emb[x[:, :, 1].astype(jnp.int32)]
    e2 = emb[x[:, :, -6].astype(jnp.int32)]
    x_init = jnp.concatenate([x[:, :, 0:1], e1, x[:, :, 2:-6], e2, x[:, :, -5:]],
                             axis=-1)
    head_w = x_init.shape[-1] - 5 - e
    x_0 = jnp.concatenate([jnp.full((B, 1, head_w), -0.1, jnp.float32),
                           x_init[:, 0:1, -(5 + e):]], axis=-1)
    x_init = jnp.concatenate([x_0, x_init[:, :-1, :]], axis=1).astype(jnp.float32)

    # ONE fused Pallas launch: local proj + PE + both encoder layers + all
    # 7 decoder-head matmuls (lane-dense grouped 128-wide output).
    dec = fused_backbone(x_init, cond_x[:, :, :6].astype(jnp.float32),
                         packed, cfg, fold_batch)

    lay = decoder_layout(n_loc)
    logits0 = dec[..., 0:2]
    logits1 = dec[..., lay['off_cat1']:lay['off_cat1'] + n_loc]
    wl = dec[..., lay['off_wl']:lay['off_wl'] + NGMM * NCMAX].reshape(B, T, NGMM, NCMAX)
    mu = dec[..., lay['off_mu']:lay['off_mu'] + NGMM * NCMAX].reshape(B, T, NGMM, NCMAX)
    lsg = dec[..., lay['off_ls']:lay['off_ls'] + NGMM * NCMAX].reshape(B, T, NGMM, NCMAX)

    comp_valid = jnp.arange(NCMAX)[None, :] < jnp.asarray(NCS)[:, None]   # (5, 7)
    wl = jnp.where(comp_valid, wl, -1e30)
    sigma = jnp.where(comp_valid, jnp.exp(lsg), 1.0)

    # --- sampling (Gumbel-softmax relaxation; GMM heads batched) ---
    # TODO(synk): soft expectation instead of hard/straight-through Gumbel
    #             argmax; tau=0.01 makes it nearly hard.
    g0 = _gumbel(keys[1], logits0.shape)
    s0 = jnp.sum(jax.nn.softmax((logits0 + g0) / tau, axis=-1)
                 * jnp.arange(2, dtype=jnp.float32), axis=-1, keepdims=True)
    g1 = _gumbel(keys[2], logits1.shape)
    s1 = jnp.sum(jax.nn.softmax((logits1 + g1) / tau, axis=-1)
                 * jnp.arange(n_loc, dtype=jnp.float32), axis=-1, keepdims=True)
    gg = _gumbel(keys[3], wl.shape)
    softg = jax.nn.softmax((wl + gg) / tau, axis=-1)
    eps = jax.random.normal(keys[4], mu.shape)
    sg = jnp.sum(softg * (mu + sigma * eps), axis=-1)                 # (B, T, 5)
    sample = jnp.concatenate([s0, s1, sg], axis=-1)                   # (B, T, 7)

    cond_loss = constraint_loss(sample, cond_x)

    # --- reconstruction loss (GMM heads vectorized) ---
    session_loss = -jnp.mean(categorical_logprob(logits0, y[:, :, 0].astype(jnp.int32)))
    loc_loss = -jnp.mean(categorical_logprob(logits1, y[:, :, 1].astype(jnp.int32)))
    logw = jax.nn.log_softmax(wl, axis=-1)
    yc = y[:, :, 2:7][..., None]                                      # (B, T, 5, 1)
    comp_lp = (-0.5 * ((yc - mu) / sigma) ** 2 - jnp.log(sigma)
               - 0.5 * math.log(2.0 * math.pi))
    z = logw + comp_lp
    m = jnp.max(z, axis=-1, keepdims=True)
    gmm_lp = (m + jnp.log(jnp.sum(jnp.exp(z - m), axis=-1, keepdims=True)))[..., 0]
    gmm_loss = -jnp.sum(jnp.mean(gmm_lp, axis=(0, 1)))
    rec_loss = session_loss + loc_loss + gmm_loss

    return p0_loss, rec_loss, cond_loss


# ----------------------------------------------------------------------------
# Deterministic parameter init
# ----------------------------------------------------------------------------
def init_params(key, cfg):
    D, e, xd = cfg['d_model'], cfg['embed_len'], cfg['x_dim']
    x_enclen = xd - 2 + 2 * e
    ks = iter(jax.random.split(key, 128))

    def lin(i, o):
        return (jax.random.normal(next(ks), (i, o), jnp.float32) / math.sqrt(i),
                jnp.zeros((o,), jnp.float32))

    p = {}
    p['embed'] = jax.random.normal(next(ks), (cfg['n_loc'], e), jnp.float32)
    p['local_w'], p['local_b'] = lin(x_enclen, D)
    p['pos_table'] = sinusoidal_pe(cfg['time_step'], D)

    layers = []
    for _ in range(cfg['n_layers']):
        lp = {}
        lp['wq'], lp['bq'] = lin(D, D)
        lp['wk'], lp['bk'] = lin(D, D)
        lp['wv'], lp['bv'] = lin(D, D)
        lp['wo'], lp['bo'] = lin(D, D)
        lp['w1'], lp['b1'] = lin(D, 4 * D)
        lp['w2'], lp['b2'] = lin(4 * D, D)
        lp['ln1_w'], lp['ln1_b'] = jnp.ones((D,), jnp.float32), jnp.zeros((D,), jnp.float32)
        lp['ln2_w'], lp['ln2_b'] = jnp.ones((D,), jnp.float32), jnp.zeros((D,), jnp.float32)
        layers.append(lp)
    p['layers'] = layers

    dec_out = {0: 2, 1: cfg['n_loc'], 2: 3 * 7, 3: 3 * 3, 4: 3 * 5, 5: 3 * 6, 6: 3 * 3}
    for i in range(7):
        p[f'dec{i}_w'], p[f'dec{i}_b'] = lin(D + i, dec_out[i])

    latent, init_dim, hdim = 4, 6, 64
    p['p0_w1'], p['p0_b1'] = lin(init_dim, hdim)
    p['p0_w2'], p['p0_b2'] = lin(hdim, 2 * latent)
    p['p0_w3'], p['p0_b3'] = lin(latent, init_dim)
    return p


if __name__ == "__main__":
    cfg = dict(x_dim=13, time_step=8, n_head=4, n_layers=2, d_model=32,
               n_loc=10, embed_len=4, tau=0.01)
    B, T, xd = 2, cfg['time_step'], cfg['x_dim']

    key = jax.random.PRNGKey(0)
    kp, kx, ki, kf = jax.random.split(key, 4)
    params = init_params(kp, cfg)

    ku = jax.random.split(kx, 5)
    cont = jax.random.uniform(ku[0], (B, T, xd), dtype=jnp.float32)
    trip_kind = jnp.floor(jax.random.uniform(ku[1], (B, T, 1)) * 2.0)
    loc = jnp.floor(jax.random.uniform(ku[2], (B, T, 1)) * cfg['n_loc'])
    origin = jnp.floor(jax.random.uniform(ku[3], (B, T, 1)) * cfg['n_loc'])
    # columns: 0 trip_kind, 1 loc, 2..6 continuous, 7 origin-loc, 8..11 continuous
    # (col 8 = start_soc), 12 month-fraction in [0,1)
    batch_x = jnp.concatenate(
        [trip_kind, loc, cont[:, :, 2:7], origin, cont[:, :, 8:13]], axis=-1)
    init = jax.random.uniform(ki, (B, 6), dtype=jnp.float32)

    fold = _should_fold_batch()
    # weight packing hoisted out of the jitted step (computed once).
    packed = pack_params(params, cfg, T, B, fold)

    fwd = jax.jit(functools.partial(forward, cfg=cfg, fold_batch=fold))
    p0_loss, rec_loss, cond_loss = fwd(params, packed, batch_x, init, kf)
    jax.block_until_ready((p0_loss, rec_loss, cond_loss))
    print("KERNEL_OK")
</pallas_src>

<mosaic_0001>
module attributes {stable_mosaic.version = 11 : i64} {
  func.func @_fused_backbone_kernel(%arg0: i32, %arg1: memref<16x19xf32, #tpu.memory_space<vmem>>, %arg2: memref<16x6xf32, #tpu.memory_space<vmem>>, %arg3: memref<16x32xf32, #tpu.memory_space<vmem>>, %arg4: memref<16x16xf32, #tpu.memory_space<vmem>>, %arg5: memref<19x32xf32, #tpu.memory_space<vmem>>, %arg6: memref<1x32xf32, #tpu.memory_space<vmem>>, %arg7: memref<2x32x32xf32, #tpu.memory_space<vmem>>, %arg8: memref<2x32x32xf32, #tpu.memory_space<vmem>>, %arg9: memref<2x32x32xf32, #tpu.memory_space<vmem>>, %arg10: memref<2x32x32xf32, #tpu.memory_space<vmem>>, %arg11: memref<2x32x128xf32, #tpu.memory_space<vmem>>, %arg12: memref<2x128x32xf32, #tpu.memory_space<vmem>>, %arg13: memref<2x16x32xf32, #tpu.memory_space<vmem>>, %arg14: memref<2x1x128xf32, #tpu.memory_space<vmem>>, %arg15: memref<32x128xf32, #tpu.memory_space<vmem>>, %arg16: memref<6x128xf32, #tpu.memory_space<vmem>>, %arg17: memref<1x128xf32, #tpu.memory_space<vmem>>, %arg18: memref<16x128xf32, #tpu.memory_space<vmem>>) attributes {dimension_semantics = [#tpu.dimension_semantics<parallel>], iteration_bounds = array<i64: 1>, scalar_prefetch = 0 : i64, scratch_operands = 0 : i64, tpu.core_type = #tpu.core_type<tc>, window_params = [{transform_indices = @transform_0, window_bounds = array<i64: 16, 19>}, {transform_indices = @transform_1, window_bounds = array<i64: 16, 6>}, {pipeline_mode = #tpu.pipeline_mode<synchronous>, transform_indices = @transform_2, window_bounds = array<i64: 16, 32>}, {pipeline_mode = #tpu.pipeline_mode<synchronous>, transform_indices = @transform_3, window_bounds = array<i64: 16, 16>}, {pipeline_mode = #tpu.pipeline_mode<synchronous>, transform_indices = @transform_4, window_bounds = array<i64: 19, 32>}, {pipeline_mode = #tpu.pipeline_mode<synchronous>, transform_indices = @transform_5, window_bounds = array<i64: 1, 32>}, {pipeline_mode = #tpu.pipeline_mode<synchronous>, transform_indices = @transform_6, window_bounds = array<i64: 2, 32, 32>}, {pipeline_mode = #tpu.pipeline_mode<synchronous>, transform_indices = @transform_7, window_bounds = array<i64: 2, 32, 32>}, {pipeline_mode = #tpu.pipeline_mode<synchronous>, transform_indices = @transform_8, window_bounds = array<i64: 2, 32, 32>}, {pipeline_mode = #tpu.pipeline_mode<synchronous>, transform_indices = @transform_9, window_bounds = array<i64: 2, 32, 32>}, {pipeline_mode = #tpu.pipeline_mode<synchronous>, transform_indices = @transform_10, window_bounds = array<i64: 2, 32, 128>}, {pipeline_mode = #tpu.pipeline_mode<synchronous>, transform_indices = @transform_11, window_bounds = array<i64: 2, 128, 32>}, {pipeline_mode = #tpu.pipeline_mode<synchronous>, transform_indices = @transform_12, window_bounds = array<i64: 2, 16, 32>}, {pipeline_mode = #tpu.pipeline_mode<synchronous>, transform_indices = @transform_13, window_bounds = array<i64: 2, 1, 128>}, {pipeline_mode = #tpu.pipeline_mode<synchronous>, transform_indices = @transform_14, window_bounds = array<i64: 32, 128>}, {pipeline_mode = #tpu.pipeline_mode<synchronous>, transform_indices = @transform_15, window_bounds = array<i64: 6, 128>}, {pipeline_mode = #tpu.pipeline_mode<synchronous>, transform_indices = @transform_16, window_bounds = array<i64: 1, 128>}, {transform_indices = @transform_17, window_bounds = array<i64: 16, 128>}]} {
    %c0 = arith.constant 0 : index
    %c0_0 = arith.constant 0 : index
    %0 = vector.load %arg1[%c0, %c0_0] : memref<16x19xf32, #tpu.memory_space<vmem>>, vector<16x19xf32>
    %c0_1 = arith.constant 0 : index
    %c0_2 = arith.constant 0 : index
    %1 = vector.load %arg5[%c0_1, %c0_2] : memref<19x32xf32, #tpu.memory_space<vmem>>, vector<19x32xf32>
    %cst = arith.constant dense<0.000000e+00> : vector<16x32xf32>
    %2 = tpu.matmul %0, %1, %cst {dimension_numbers = #tpu.dot_dimension_numbers<[1], [0], [0], [1], [0, 0, 1, 1], [], []>} : vector<16x19xf32>, vector<19x32xf32>, vector<16x32xf32> -> vector<16x32xf32>
    %c0_3 = arith.constant 0 : index
    %c0_4 = arith.constant 0 : index
    %3 = vector.load %arg6[%c0_3, %c0_4] : memref<1x32xf32, #tpu.memory_space<vmem>>, vector<1x32xf32>
    %4 = vector.broadcast %3 : vector<1x32xf32> to vector<16x32xf32>
    %5 = arith.addf %2, %4 : vector<16x32xf32>
    %c0_5 = arith.constant 0 : index
    %c0_6 = arith.constant 0 : index
    %6 = vector.load %arg3[%c0_5, %c0_6] : memref<16x32xf32, #tpu.memory_space<vmem>>, vector<16x32xf32>
    %7 = arith.addf %5, %6 : vector<16x32xf32>
    %c0_7 = arith.constant 0 : index
    %c0_8 = arith.constant 0 : index
    %8 = vector.load %arg4[%c0_7, %c0_8] : memref<16x16xf32, #tpu.memory_space<vmem>>, vector<16x16xf32>
    %c0_9 = arith.constant 0 : index
    %c0_10 = arith.constant 0 : index
    %c0_11 = arith.constant 0 : index
    %9 = vector.load %arg13[%c0_9, %c0_10, %c0_11] : memref<2x16x32xf32, #tpu.memory_space<vmem>>, vector<1x16x32xf32>
    %10 = vector.shape_cast %9 : vector<1x16x32xf32> to vector<16x32xf32>
    %c0_12 = arith.constant 0 : index
    %c0_13 = arith.constant 0 : index
    %c0_14 = arith.constant 0 : index
    %11 = vector.load %arg7[%c0_12, %c0_13, %c0_14] : memref<2x32x32xf32, #tpu.memory_space<vmem>>, vector<1x32x32xf32>
    %12 = vector.shape_cast %11 : vector<1x32x32xf32> to vector<32x32xf32>
    %cst_15 = arith.constant dense<0.000000e+00> : vector<16x32xf32>
    %13 = tpu.matmul %7, %12, %cst_15 {dimension_numbers = #tpu.dot_dimension_numbers<[1], [0], [0], [1], [0, 0, 1, 1], [], []>} : vector<16x32xf32>, vector<32x32xf32>, vector<16x32xf32> -> vector<16x32xf32>
    %14 = vector.extract_strided_slice %10 {offsets = [0, 0], sizes = [1, 32], strides = [1, 1]} : vector<16x32xf32> to vector<1x32xf32>
    %15 = vector.broadcast %14 : vector<1x32xf32> to vector<16x32xf32>
    %16 = arith.addf %13, %15 : vector<16x32xf32>
    %c0_16 = arith.constant 0 : index
    %c0_17 = arith.constant 0 : index
    %c0_18 = arith.constant 0 : index
    %17 = vector.load %arg8[%c0_16, %c0_17, %c0_18] : memref<2x32x32xf32, #tpu.memory_space<vmem>>, vector<1x32x32xf32>
    %18 = vector.shape_cast %17 : vector<1x32x32xf32> to vector<32x32xf32>
    %cst_19 = arith.constant dense<0.000000e+00> : vector<16x32xf32>
    %19 = tpu.matmul %7, %18, %cst_19 {dimension_numbers = #tpu.dot_dimension_numbers<[1], [0], [0], [1], [0, 0, 1, 1], [], []>} : vector<16x32xf32>, vector<32x32xf32>, vector<16x32xf32> -> vector<16x32xf32>
    %20 = vector.extract_strided_slice %10 {offsets = [1, 0], sizes = [1, 32], strides = [1, 1]} : vector<16x32xf32> to vector<1x32xf32>
    %21 = vector.broadcast %20 : vector<1x32xf32> to vector<16x32xf32>
    %22 = arith.addf %19, %21 : vector<16x32xf32>
    %c0_20 = arith.constant 0 : index
    %c0_21 = arith.constant 0 : index
    %c0_22 = arith.constant 0 : index
    %23 = vector.load %arg9[%c0_20, %c0_21, %c0_22] : memref<2x32x32xf32, #tpu.memory_space<vmem>>, vector<1x32x32xf32>
    %24 = vector.shape_cast %23 : vector<1x32x32xf32> to vector<32x32xf32>
    %cst_23 = arith.constant dense<0.000000e+00> : vector<16x32xf32>
    %25 = tpu.matmul %7, %24, %cst_23 {dimension_numbers = #tpu.dot_dimension_numbers<[1], [0], [0], [1], [0, 0, 1, 1], [], []>} : vector<16x32xf32>, vector<32x32xf32>, vector<16x32xf32> -> vector<16x32xf32>
    %26 = vector.extract_strided_slice %10 {offsets = [2, 0], sizes = [1, 32], strides = [1, 1]} : vector<16x32xf32> to vector<1x32xf32>
    %27 = vector.broadcast %26 : vector<1x32xf32> to vector<16x32xf32>
    %28 = arith.addf %25, %27 : vector<16x32xf32>
    %29 = tpu.transpose %22, [1, 0] : vector<16x32xf32> -> vector<32x16xf32>
    %c0_24 = arith.constant 0 : index
    %c0_25 = arith.constant 0 : index
    %c0_26 = arith.constant 0 : index
    %30 = vector.load %arg10[%c0_24, %c0_25, %c0_26] : memref<2x32x32xf32, #tpu.memory_space<vmem>>, vector<1x32x32xf32>
    %31 = vector.shape_cast %30 : vector<1x32x32xf32> to vector<32x32xf32>
    %cst_27 = arith.constant 0.000000e+00 : f32
    %32 = vector.broadcast %cst_27 : f32 to vector<16x32xf32>
    %33 = vector.extract_strided_slice %16 {offsets = [0, 0], sizes = [16, 8], strides = [1, 1]} : vector<16x32xf32> to vector<16x8xf32>
    %34 = vector.extract_strided_slice %29 {offsets = [0, 0], sizes = [8, 16], strides = [1, 1]} : vector<32x16xf32> to vector<8x16xf32>
    %cst_28 = arith.constant dense<0.000000e+00> : vector<16x16xf32>
    %35 = tpu.matmul %33, %34, %cst_28 {dimension_numbers = #tpu.dot_dimension_numbers<[1], [0], [0], [1], [0, 0, 1, 1], [], []>} : vector<16x8xf32>, vector<8x16xf32>, vector<16x16xf32> -> vector<16x16xf32>
    %36 = arith.addf %35, %8 : vector<16x16xf32>
    %cst_29 = arith.constant dense<0xFF800000> : vector<16xf32>
    %37 = vector.multi_reduction <maximumf>, %36, %cst_29 [1] : vector<16x16xf32> to vector<16xf32>
    %38 = vector.shape_cast %37 : vector<16xf32> to vector<16x1xf32>
    %39 = vector.broadcast %38 : vector<16x1xf32> to vector<16x16xf32>
    %40 = arith.subf %36, %39 : vector<16x16xf32>
    %41 = math.exp %40 : vector<16x16xf32>
    %cst_30 = arith.constant dense<0.000000e+00> : vector<16xf32>
    %42 = vector.multi_reduction <add>, %41, %cst_30 [1] : vector<16x16xf32> to vector<16xf32>
    %43 = vector.shape_cast %42 : vector<16xf32> to vector<16x1xf32>
    %44 = tpu.reciprocal %43 {approx = true} : vector<16x1xf32> -> vector<16x1xf32>
    %45 = vector.broadcast %44 : vector<16x1xf32> to vector<16x16xf32>
    %46 = arith.mulf %41, %45 : vector<16x16xf32>
    %47 = vector.extract_strided_slice %28 {offsets = [0, 0], sizes = [16, 8], strides = [1, 1]} : vector<16x32xf32> to vector<16x8xf32>
    %cst_31 = arith.constant dense<0.000000e+00> : vector<16x8xf32>
    %48 = tpu.matmul %46, %47, %cst_31 {dimension_numbers = #tpu.dot_dimension_numbers<[1], [0], [0], [1], [0, 0, 1, 1], [], []>} : vector<16x16xf32>, vector<16x8xf32>, vector<16x8xf32> -> vector<16x8xf32>
    %49 = vector.extract_strided_slice %31 {offsets = [0, 0], sizes = [8, 32], strides = [1, 1]} : vector<32x32xf32> to vector<8x32xf32>
    %cst_32 = arith.constant dense<0.000000e+00> : vector<16x32xf32>
    %50 = tpu.matmul %48, %49, %cst_32 {dimension_numbers = #tpu.dot_dimension_numbers<[1], [0], [0], [1], [0, 0, 1, 1], [], []>} : vector<16x8xf32>, vector<8x32xf32>, vector<16x32xf32> -> vector<16x32xf32>
    %51 = arith.addf %32, %50 : vector<16x32xf32>
    %52 = vector.extract_strided_slice %16 {offsets = [0, 8], sizes = [16, 8], strides = [1, 1]} : vector<16x32xf32> to vector<16x8xf32>
    %53 = vector.extract_strided_slice %29 {offsets = [8, 0], sizes = [8, 16], strides = [1, 1]} : vector<32x16xf32> to vector<8x16xf32>
    %cst_33 = arith.constant dense<0.000000e+00> : vector<16x16xf32>
    %54 = tpu.matmul %52, %53, %cst_33 {dimension_numbers = #tpu.dot_dimension_numbers<[1], [0], [0], [1], [0, 0, 1, 1], [], []>} : vector<16x8xf32>, vector<8x16xf32>, vector<16x16xf32> -> vector<16x16xf32>
    %55 = arith.addf %54, %8 : vector<16x16xf32>
    %cst_34 = arith.constant dense<0xFF800000> : vector<16xf32>
    %56 = vector.multi_reduction <maximumf>, %55, %cst_34 [1] : vector<16x16xf32> to vector<16xf32>
    %57 = vector.shape_cast %56 : vector<16xf32> to vector<16x1xf32>
    %58 = vector.broadcast %57 : vector<16x1xf32> to vector<16x16xf32>
    %59 = arith.subf %55, %58 : vector<16x16xf32>
    %60 = math.exp %59 : vector<16x16xf32>
    %cst_35 = arith.constant dense<0.000000e+00> : vector<16xf32>
    %61 = vector.multi_reduction <add>, %60, %cst_35 [1] : vector<16x16xf32> to vector<16xf32>
    %62 = vector.shape_cast %61 : vector<16xf32> to vector<16x1xf32>
    %63 = tpu.reciprocal %62 {approx = true} : vector<16x1xf32> -> vector<16x1xf32>
    %64 = vector.broadcast %63 : vector<16x1xf32> to vector<16x16xf32>
    %65 = arith.mulf %60, %64 : vector<16x16xf32>
    %66 = vector.extract_strided_slice %28 {offsets = [0, 8], sizes = [16, 8], strides = [1, 1]} : vector<16x32xf32> to vector<16x8xf32>
    %cst_36 = arith.constant dense<0.000000e+00> : vector<16x8xf32>
    %67 = tpu.matmul %65, %66, %cst_36 {dimension_numbers = #tpu.dot_dimension_numbers<[1], [0], [0], [1], [0, 0, 1, 1], [], []>} : vector<16x16xf32>, vector<16x8xf32>, vector<16x8xf32> -> vector<16x8xf32>
    %68 = vector.extract_strided_slice %31 {offsets = [8, 0], sizes = [8, 32], strides = [1, 1]} : vector<32x32xf32> to vector<8x32xf32>
    %cst_37 = arith.constant dense<0.000000e+00> : vector<16x32xf32>
    %69 = tpu.matmul %67, %68, %cst_37 {dimension_numbers = #tpu.dot_dimension_numbers<[1], [0], [0], [1], [0, 0, 1, 1], [], []>} : vector<16x8xf32>, vector<8x32xf32>, vector<16x32xf32> -> vector<16x32xf32>
    %70 = arith.addf %51, %69 : vector<16x32xf32>
    %71 = vector.extract_strided_slice %16 {offsets = [0, 16], sizes = [16, 8], strides = [1, 1]} : vector<16x32xf32> to vector<16x8xf32>
    %72 = vector.extract_strided_slice %29 {offsets = [16, 0], sizes = [8, 16], strides = [1, 1]} : vector<32x16xf32> to vector<8x16xf32>
    %cst_38 = arith.constant dense<0.000000e+00> : vector<16x16xf32>
    %73 = tpu.matmul %71, %72, %cst_38 {dimension_numbers = #tpu.dot_dimension_numbers<[1], [0], [0], [1], [0, 0, 1, 1], [], []>} : vector<16x8xf32>, vector<8x16xf32>, vector<16x16xf32> -> vector<16x16xf32>
    %74 = arith.addf %73, %8 : vector<16x16xf32>
    %cst_39 = arith.constant dense<0xFF800000> : vector<16xf32>
    %75 = vector.multi_reduction <maximumf>, %74, %cst_39 [1] : vector<16x16xf32> to vector<16xf32>
    %76 = vector.shape_cast %75 : vector<16xf32> to vector<16x1xf32>
    %77 = vector.broadcast %76 : vector<16x1xf32> to vector<16x16xf32>
    %78 = arith.subf %74, %77 : vector<16x16xf32>
    %79 = math.exp %78 : vector<16x16xf32>
    %cst_40 = arith.constant dense<0.000000e+00> : vector<16xf32>
    %80 = vector.multi_reduction <add>, %79, %cst_40 [1] : vector<16x16xf32> to vector<16xf32>
    %81 = vector.shape_cast %80 : vector<16xf32> to vector<16x1xf32>
    %82 = tpu.reciprocal %81 {approx = true} : vector<16x1xf32> -> vector<16x1xf32>
    %83 = vector.broadcast %82 : vector<16x1xf32> to vector<16x16xf32>
    %84 = arith.mulf %79, %83 : vector<16x16xf32>
    %85 = vector.extract_strided_slice %28 {offsets = [0, 16], sizes = [16, 8], strides = [1, 1]} : vector<16x32xf32> to vector<16x8xf32>
    %cst_41 = arith.constant dense<0.000000e+00> : vector<16x8xf32>
    %86 = tpu.matmul %84, %85, %cst_41 {dimension_numbers = #tpu.dot_dimension_numbers<[1], [0], [0], [1], [0, 0, 1, 1], [], []>} : vector<16x16xf32>, vector<16x8xf32>, vector<16x8xf32> -> vector<16x8xf32>
    %87 = vector.extract_strided_slice %31 {offsets = [16, 0], sizes = [8, 32], strides = [1, 1]} : vector<32x32xf32> to vector<8x32xf32>
    %cst_42 = arith.constant dense<0.000000e+00> : vector<16x32xf32>
    %88 = tpu.matmul %86, %87, %cst_42 {dimension_numbers = #tpu.dot_dimension_numbers<[1], [0], [0], [1], [0, 0, 1, 1], [], []>} : vector<16x8xf32>, vector<8x32xf32>, vector<16x32xf32> -> vector<16x32xf32>
    %89 = arith.addf %70, %88 : vector<16x32xf32>
    %90 = vector.extract_strided_slice %16 {offsets = [0, 24], sizes = [16, 8], strides = [1, 1]} : vector<16x32xf32> to vector<16x8xf32>
    %91 = vector.extract_strided_slice %29 {offsets = [24, 0], sizes = [8, 16], strides = [1, 1]} : vector<32x16xf32> to vector<8x16xf32>
    %cst_43 = arith.constant dense<0.000000e+00> : vector<16x16xf32>
    %92 = tpu.matmul %90, %91, %cst_43 {dimension_numbers = #tpu.dot_dimension_numbers<[1], [0], [0], [1], [0, 0, 1, 1], [], []>} : vector<16x8xf32>, vector<8x16xf32>, vector<16x16xf32> -> vector<16x16xf32>
    %93 = arith.addf %92, %8 : vector<16x16xf32>
    %cst_44 = arith.constant dense<0xFF800000> : vector<16xf32>
    %94 = vector.multi_reduction <maximumf>, %93, %cst_44 [1] : vector<16x16xf32> to vector<16xf32>
    %95 = vector.shape_cast %94 : vector<16xf32> to vector<16x1xf32>
    %96 = vector.broadcast %95 : vector<16x1xf32> to vector<16x16xf32>
    %97 = arith.subf %93, %96 : vector<16x16xf32>
    %98 = math.exp %97 : vector<16x16xf32>
    %cst_45 = arith.constant dense<0.000000e+00> : vector<16xf32>
    %99 = vector.multi_reduction <add>, %98, %cst_45 [1] : vector<16x16xf32> to vector<16xf32>
    %100 = vector.shape_cast %99 : vector<16xf32> to vector<16x1xf32>
    %101 = tpu.reciprocal %100 {approx = true} : vector<16x1xf32> -> vector<16x1xf32>
    %102 = vector.broadcast %101 : vector<16x1xf32> to vector<16x16xf32>
    %103 = arith.mulf %98, %102 : vector<16x16xf32>
    %104 = vector.extract_strided_slice %28 {offsets = [0, 24], sizes = [16, 8], strides = [1, 1]} : vector<16x32xf32> to vector<16x8xf32>
    %cst_46 = arith.constant dense<0.000000e+00> : vector<16x8xf32>
    %105 = tpu.matmul %103, %104, %cst_46 {dimension_numbers = #tpu.dot_dimension_numbers<[1], [0], [0], [1], [0, 0, 1, 1], [], []>} : vector<16x16xf32>, vector<16x8xf32>, vector<16x8xf32> -> vector<16x8xf32>
    %106 = vector.extract_strided_slice %31 {offsets = [24, 0], sizes = [8, 32], strides = [1, 1]} : vector<32x32xf32> to vector<8x32xf32>
    %cst_47 = arith.constant dense<0.000000e+00> : vector<16x32xf32>
    %107 = tpu.matmul %105, %106, %cst_47 {dimension_numbers = #tpu.dot_dimension_numbers<[1], [0], [0], [1], [0, 0, 1, 1], [], []>} : vector<16x8xf32>, vector<8x32xf32>, vector<16x32xf32> -> vector<16x32xf32>
    %108 = arith.addf %89, %107 : vector<16x32xf32>
    %109 = vector.extract_strided_slice %10 {offsets = [3, 0], sizes = [1, 32], strides = [1, 1]} : vector<16x32xf32> to vector<1x32xf32>
    %110 = vector.broadcast %109 : vector<1x32xf32> to vector<16x32xf32>
    %111 = arith.addf %108, %110 : vector<16x32xf32>
    %112 = arith.addf %7, %111 : vector<16x32xf32>
    %113 = vector.extract_strided_slice %10 {offsets = [5, 0], sizes = [1, 32], strides = [1, 1]} : vector<16x32xf32> to vector<1x32xf32>
    %114 = vector.extract_strided_slice %10 {offsets = [6, 0], sizes = [1, 32], strides = [1, 1]} : vector<16x32xf32> to vector<1x32xf32>
    %cst_48 = arith.constant dense<0.000000e+00> : vector<16xf32>
    %115 = vector.multi_reduction <add>, %112, %cst_48 [1] : vector<16x32xf32> to vector<16xf32>
    %116 = vector.shape_cast %115 : vector<16xf32> to vector<16x1xf32>
    %cst_49 = arith.constant 3.200000e+01 : f32
    %117 = vector.broadcast %cst_49 : f32 to vector<16x1xf32>
    %118 = arith.divf %116, %117 : vector<16x1xf32>
    %119 = vector.broadcast %118 : vector<16x1xf32> to vector<16x32xf32>
    %120 = arith.subf %112, %119 : vector<16x32xf32>
    %121 = arith.mulf %120, %120 : vector<16x32xf32>
    %cst_50 = arith.constant dense<0.000000e+00> : vector<16xf32>
    %122 = vector.multi_reduction <add>, %121, %cst_50 [1] : vector<16x32xf32> to vector<16xf32>
    %123 = vector.shape_cast %122 : vector<16xf32> to vector<16x1xf32>
    %cst_51 = arith.constant 3.200000e+01 : f32
    %124 = vector.broadcast %cst_51 : f32 to vector<16x1xf32>
    %125 = arith.divf %123, %124 : vector<16x1xf32>
    %126 = vector.broadcast %118 : vector<16x1xf32> to vector<16x32xf32>
    %127 = arith.subf %112, %126 : vector<16x32xf32>
    %cst_52 = arith.constant 9.99999974E-6 : f32
    %128 = vector.broadcast %cst_52 : f32 to vector<16x1xf32>
    %129 = arith.addf %125, %128 : vector<16x1xf32>
    %130 = math.rsqrt %129 : vector<16x1xf32>
    %131 = vector.broadcast %130 : vector<16x1xf32> to vector<16x32xf32>
    %132 = arith.mulf %127, %131 : vector<16x32xf32>
    %133 = vector.broadcast %113 : vector<1x32xf32> to vector<16x32xf32>
    %134 = arith.mulf %132, %133 : vector<16x32xf32>
    %135 = vector.broadcast %114 : vector<1x32xf32> to vector<16x32xf32>
    %136 = arith.addf %134, %135 : vector<16x32xf32>
    %c0_53 = arith.constant 0 : index
    %c0_54 = arith.constant 0 : index
    %c0_55 = arith.constant 0 : index
    %137 = vector.load %arg11[%c0_53, %c0_54, %c0_55] : memref<2x32x128xf32, #tpu.memory_space<vmem>>, vector<1x32x128xf32>
    %138 = vector.shape_cast %137 : vector<1x32x128xf32> to vector<32x128xf32>
    %cst_56 = arith.constant dense<0.000000e+00> : vector<16x128xf32>
    %139 = tpu.matmul %136, %138, %cst_56 {dimension_numbers = #tpu.dot_dimension_numbers<[1], [0], [0], [1], [0, 0, 1, 1], [], []>} : vector<16x32xf32>, vector<32x128xf32>, vector<16x128xf32> -> vector<16x128xf32>
    %c0_57 = arith.constant 0 : index
    %c0_58 = arith.constant 0 : index
    %c0_59 = arith.constant 0 : index
    %140 = vector.load %arg14[%c0_57, %c0_58, %c0_59] : memref<2x1x128xf32, #tpu.memory_space<vmem>>, vector<1x1x128xf32>
    %141 = vector.shape_cast %140 : vector<1x1x128xf32> to vector<1x128xf32>
    %142 = vector.broadcast %141 : vector<1x128xf32> to vector<16x128xf32>
    %143 = arith.addf %139, %142 : vector<16x128xf32>
    %cst_60 = arith.constant 0.000000e+00 : f32
    %144 = vector.broadcast %cst_60 : f32 to vector<16x128xf32>
    %145 = arith.maximumf %143, %144 : vector<16x128xf32>
    %c0_61 = arith.constant 0 : index
    %c0_62 = arith.constant 0 : index
    %c0_63 = arith.constant 0 : index
    %146 = vector.load %arg12[%c0_61, %c0_62, %c0_63] : memref<2x128x32xf32, #tpu.memory_space<vmem>>, vector<1x128x32xf32>
    %147 = vector.shape_cast %146 : vector<1x128x32xf32> to vector<128x32xf32>
    %cst_64 = arith.constant dense<0.000000e+00> : vector<16x32xf32>
    %148 = tpu.matmul %145, %147, %cst_64 {dimension_numbers = #tpu.dot_dimension_numbers<[1], [0], [0], [1], [0, 0, 1, 1], [], []>} : vector<16x128xf32>, vector<128x32xf32>, vector<16x32xf32> -> vector<16x32xf32>
    %149 = vector.extract_strided_slice %10 {offsets = [4, 0], sizes = [1, 32], strides = [1, 1]} : vector<16x32xf32> to vector<1x32xf32>
    %150 = vector.broadcast %149 : vector<1x32xf32> to vector<16x32xf32>
    %151 = arith.addf %148, %150 : vector<16x32xf32>
    %152 = arith.addf %136, %151 : vector<16x32xf32>
    %153 = vector.extract_strided_slice %10 {offsets = [7, 0], sizes = [1, 32], strides = [1, 1]} : vector<16x32xf32> to vector<1x32xf32>
    %154 = vector.extract_strided_slice %10 {offsets = [8, 0], sizes = [1, 32], strides = [1, 1]} : vector<16x32xf32> to vector<1x32xf32>
    %cst_65 = arith.constant dense<0.000000e+00> : vector<16xf32>
    %155 = vector.multi_reduction <add>, %152, %cst_65 [1] : vector<16x32xf32> to vector<16xf32>
    %156 = vector.shape_cast %155 : vector<16xf32> to vector<16x1xf32>
    %cst_66 = arith.constant 3.200000e+01 : f32
    %157 = vector.broadcast %cst_66 : f32 to vector<16x1xf32>
    %158 = arith.divf %156, %157 : vector<16x1xf32>
    %159 = vector.broadcast %158 : vector<16x1xf32> to vector<16x32xf32>
    %160 = arith.subf %152, %159 : vector<16x32xf32>
    %161 = arith.mulf %160, %160 : vector<16x32xf32>
    %cst_67 = arith.constant dense<0.000000e+00> : vector<16xf32>
    %162 = vector.multi_reduction <add>, %161, %cst_67 [1] : vector<16x32xf32> to vector<16xf32>
    %163 = vector.shape_cast %162 : vector<16xf32> to vector<16x1xf32>
    %cst_68 = arith.constant 3.200000e+01 : f32
    %164 = vector.broadcast %cst_68 : f32 to vector<16x1xf32>
    %165 = arith.divf %163, %164 : vector<16x1xf32>
    %166 = vector.broadcast %158 : vector<16x1xf32> to vector<16x32xf32>
    %167 = arith.subf %152, %166 : vector<16x32xf32>
    %cst_69 = arith.constant 9.99999974E-6 : f32
    %168 = vector.broadcast %cst_69 : f32 to vector<16x1xf32>
    %169 = arith.addf %165, %168 : vector<16x1xf32>
    %170 = math.rsqrt %169 : vector<16x1xf32>
    %171 = vector.broadcast %170 : vector<16x1xf32> to vector<16x32xf32>
    %172 = arith.mulf %167, %171 : vector<16x32xf32>
    %173 = vector.broadcast %153 : vector<1x32xf32> to vector<16x32xf32>
    %174 = arith.mulf %172, %173 : vector<16x32xf32>
    %175 = vector.broadcast %154 : vector<1x32xf32> to vector<16x32xf32>
    %176 = arith.addf %174, %175 : vector<16x32xf32>
    %c1 = arith.constant 1 : index
    %c0_70 = arith.constant 0 : index
    %c0_71 = arith.constant 0 : index
    %177 = vector.load %arg13[%c1, %c0_70, %c0_71] : memref<2x16x32xf32, #tpu.memory_space<vmem>>, vector<1x16x32xf32>
    %178 = vector.shape_cast %177 : vector<1x16x32xf32> to vector<16x32xf32>
    %c1_72 = arith.constant 1 : index
    %c0_73 = arith.constant 0 : index
    %c0_74 = arith.constant 0 : index
    %179 = vector.load %arg7[%c1_72, %c0_73, %c0_74] : memref<2x32x32xf32, #tpu.memory_space<vmem>>, vector<1x32x32xf32>
    %180 = vector.shape_cast %179 : vector<1x32x32xf32> to vector<32x32xf32>
    %cst_75 = arith.constant dense<0.000000e+00> : vector<16x32xf32>
    %181 = tpu.matmul %176, %180, %cst_75 {dimension_numbers = #tpu.dot_dimension_numbers<[1], [0], [0], [1], [0, 0, 1, 1], [], []>} : vector<16x32xf32>, vector<32x32xf32>, vector<16x32xf32> -> vector<16x32xf32>
    %182 = vector.extract_strided_slice %178 {offsets = [0, 0], sizes = [1, 32], strides = [1, 1]} : vector<16x32xf32> to vector<1x32xf32>
    %183 = vector.broadcast %182 : vector<1x32xf32> to vector<16x32xf32>
    %184 = arith.addf %181, %183 : vector<16x32xf32>
    %c1_76 = arith.constant 1 : index
    %c0_77 = arith.constant 0 : index
    %c0_78 = arith.constant 0 : index
    %185 = vector.load %arg8[%c1_76, %c0_77, %c0_78] : memref<2x32x32xf32, #tpu.memory_space<vmem>>, vector<1x32x32xf32>
    %186 = vector.shape_cast %185 : vector<1x32x32xf32> to vector<32x32xf32>
    %cst_79 = arith.constant dense<0.000000e+00> : vector<16x32xf32>
    %187 = tpu.matmul %176, %186, %cst_79 {dimension_numbers = #tpu.dot_dimension_numbers<[1], [0], [0], [1], [0, 0, 1, 1], [], []>} : vector<16x32xf32>, vector<32x32xf32>, vector<16x32xf32> -> vector<16x32xf32>
    %188 = vector.extract_strided_slice %178 {offsets = [1, 0], sizes = [1, 32], strides = [1, 1]} : vector<16x32xf32> to vector<1x32xf32>
    %189 = vector.broadcast %188 : vector<1x32xf32> to vector<16x32xf32>
    %190 = arith.addf %187, %189 : vector<16x32xf32>
    %c1_80 = arith.constant 1 : index
    %c0_81 = arith.constant 0 : index
    %c0_82 = arith.constant 0 : index
    %191 = vector.load %arg9[%c1_80, %c0_81, %c0_82] : memref<2x32x32xf32, #tpu.memory_space<vmem>>, vector<1x32x32xf32>
    %192 = vector.shape_cast %191 : vector<1x32x32xf32> to vector<32x32xf32>
    %cst_83 = arith.constant dense<0.000000e+00> : vector<16x32xf32>
    %193 = tpu.matmul %176, %192, %cst_83 {dimension_numbers = #tpu.dot_dimension_numbers<[1], [0], [0], [1], [0, 0, 1, 1], [], []>} : vector<16x32xf32>, vector<32x32xf32>, vector<16x32xf32> -> vector<16x32xf32>
    %194 = vector.extract_strided_slice %178 {offsets = [2, 0], sizes = [1, 32], strides = [1, 1]} : vector<16x32xf32> to vector<1x32xf32>
    %195 = vector.broadcast %194 : vector<1x32xf32> to vector<16x32xf32>
    %196 = arith.addf %193, %195 : vector<16x32xf32>
    %197 = tpu.transpose %190, [1, 0] : vector<16x32xf32> -> vector<32x16xf32>
    %c1_84 = arith.constant 1 : index
    %c0_85 = arith.constant 0 : index
    %c0_86 = arith.constant 0 : index
    %198 = vector.load %arg10[%c1_84, %c0_85, %c0_86] : memref<2x32x32xf32, #tpu.memory_space<vmem>>, vector<1x32x32xf32>
    %199 = vector.shape_cast %198 : vector<1x32x32xf32> to vector<32x32xf32>
    %cst_87 = arith.constant 0.000000e+00 : f32
    %200 = vector.broadcast %cst_87 : f32 to vector<16x32xf32>
    %201 = vector.extract_strided_slice %184 {offsets = [0, 0], sizes = [16, 8], strides = [1, 1]} : vector<16x32xf32> to vector<16x8xf32>
    %202 = vector.extract_strided_slice %197 {offsets = [0, 0], sizes = [8, 16], strides = [1, 1]} : vector<32x16xf32> to vector<8x16xf32>
    %cst_88 = arith.constant dense<0.000000e+00> : vector<16x16xf32>
    %203 = tpu.matmul %201, %202, %cst_88 {dimension_numbers = #tpu.dot_dimension_numbers<[1], [0], [0], [1], [0, 0, 1, 1], [], []>} : vector<16x8xf32>, vector<8x16xf32>, vector<16x16xf32> -> vector<16x16xf32>
    %204 = arith.addf %203, %8 : vector<16x16xf32>
    %cst_89 = arith.constant dense<0xFF800000> : vector<16xf32>
    %205 = vector.multi_reduction <maximumf>, %204, %cst_89 [1] : vector<16x16xf32> to vector<16xf32>
    %206 = vector.shape_cast %205 : vector<16xf32> to vector<16x1xf32>
    %207 = vector.broadcast %206 : vector<16x1xf32> to vector<16x16xf32>
    %208 = arith.subf %204, %207 : vector<16x16xf32>
    %209 = math.exp %208 : vector<16x16xf32>
    %cst_90 = arith.constant dense<0.000000e+00> : vector<16xf32>
    %210 = vector.multi_reduction <add>, %209, %cst_90 [1] : vector<16x16xf32> to vector<16xf32>
    %211 = vector.shape_cast %210 : vector<16xf32> to vector<16x1xf32>
    %212 = tpu.reciprocal %211 {approx = true} : vector<16x1xf32> -> vector<16x1xf32>
    %213 = vector.broadcast %212 : vector<16x1xf32> to vector<16x16xf32>
    %214 = arith.mulf %209, %213 : vector<16x16xf32>
    %215 = vector.extract_strided_slice %196 {offsets = [0, 0], sizes = [16, 8], strides = [1, 1]} : vector<16x32xf32> to vector<16x8xf32>
    %cst_91 = arith.constant dense<0.000000e+00> : vector<16x8xf32>
    %216 = tpu.matmul %214, %215, %cst_91 {dimension_numbers = #tpu.dot_dimension_numbers<[1], [0], [0], [1], [0, 0, 1, 1], [], []>} : vector<16x16xf32>, vector<16x8xf32>, vector<16x8xf32> -> vector<16x8xf32>
    %217 = vector.extract_strided_slice %199 {offsets = [0, 0], sizes = [8, 32], strides = [1, 1]} : vector<32x32xf32> to vector<8x32xf32>
    %cst_92 = arith.constant dense<0.000000e+00> : vector<16x32xf32>
    %218 = tpu.matmul %216, %217, %cst_92 {dimension_numbers = #tpu.dot_dimension_numbers<[1], [0], [0], [1], [0, 0, 1, 1], [], []>} : vector<16x8xf32>, vector<8x32xf32>, vector<16x32xf32> -> vector<16x32xf32>
    %219 = arith.addf %200, %218 : vector<16x32xf32>
    %220 = vector.extract_strided_slice %184 {offsets = [0, 8], sizes = [16, 8], strides = [1, 1]} : vector<16x32xf32> to vector<16x8xf32>
    %221 = vector.extract_strided_slice %197 {offsets = [8, 0], sizes = [8, 16], strides = [1, 1]} : vector<32x16xf32> to vector<8x16xf32>
    %cst_93 = arith.constant dense<0.000000e+00> : vector<16x16xf32>
    %222 = tpu.matmul %220, %221, %cst_93 {dimension_numbers = #tpu.dot_dimension_numbers<[1], [0], [0], [1], [0, 0, 1, 1], [], []>} : vector<16x8xf32>, vector<8x16xf32>, vector<16x16xf32> -> vector<16x16xf32>
    %223 = arith.addf %222, %8 : vector<16x16xf32>
    %cst_94 = arith.constant dense<0xFF800000> : vector<16xf32>
    %224 = vector.multi_reduction <maximumf>, %223, %cst_94 [1] : vector<16x16xf32> to vector<16xf32>
    %225 = vector.shape_cast %224 : vector<16xf32> to vector<16x1xf32>
    %226 = vector.broadcast %225 : vector<16x1xf32> to vector<16x16xf32>
    %227 = arith.subf %223, %226 : vector<16x16xf32>
    %228 = math.exp %227 : vector<16x16xf32>
    %cst_95 = arith.constant dense<0.000000e+00> : vector<16xf32>
    %229 = vector.multi_reduction <add>, %228, %cst_95 [1] : vector<16x16xf32> to vector<16xf32>
    %230 = vector.shape_cast %229 : vector<16xf32> to vector<16x1xf32>
    %231 = tpu.reciprocal %230 {approx = true} : vector<16x1xf32> -> vector<16x1xf32>
    %232 = vector.broadcast %231 : vector<16x1xf32> to vector<16x16xf32>
    %233 = arith.mulf %228, %232 : vector<16x16xf32>
    %234 = vector.extract_strided_slice %196 {offsets = [0, 8], sizes = [16, 8], strides = [1, 1]} : vector<16x32xf32> to vector<16x8xf32>
    %cst_96 = arith.constant dense<0.000000e+00> : vector<16x8xf32>
    %235 = tpu.matmul %233, %234, %cst_96 {dimension_numbers = #tpu.dot_dimension_numbers<[1], [0], [0], [1], [0, 0, 1, 1], [], []>} : vector<16x16xf32>, vector<16x8xf32>, vector<16x8xf32> -> vector<16x8xf32>
    %236 = vector.extract_strided_slice %199 {offsets = [8, 0], sizes = [8, 32], strides = [1, 1]} : vector<32x32xf32> to vector<8x32xf32>
    %cst_97 = arith.constant dense<0.000000e+00> : vector<16x32xf32>
    %237 = tpu.matmul %235, %236, %cst_97 {dimension_numbers = #tpu.dot_dimension_numbers<[1], [0], [0], [1], [0, 0, 1, 1], [], []>} : vector<16x8xf32>, vector<8x32xf32>, vector<16x32xf32> -> vector<16x32xf32>
    %238 = arith.addf %219, %237 : vector<16x32xf32>
    %239 = vector.extract_strided_slice %184 {offsets = [0, 16], sizes = [16, 8], strides = [1, 1]} : vector<16x32xf32> to vector<16x8xf32>
    %240 = vector.extract_strided_slice %197 {offsets = [16, 0], sizes = [8, 16], strides = [1, 1]} : vector<32x16xf32> to vector<8x16xf32>
    %cst_98 = arith.constant dense<0.000000e+00> : vector<16x16xf32>
    %241 = tpu.matmul %239, %240, %cst_98 {dimension_numbers = #tpu.dot_dimension_numbers<[1], [0], [0], [1], [0, 0, 1, 1], [], []>} : vector<16x8xf32>, vector<8x16xf32>, vector<16x16xf32> -> vector<16x16xf32>
    %242 = arith.addf %241, %8 : vector<16x16xf32>
    %cst_99 = arith.constant dense<0xFF800000> : vector<16xf32>
    %243 = vector.multi_reduction <maximumf>, %242, %cst_99 [1] : vector<16x16xf32> to vector<16xf32>
    %244 = vector.shape_cast %243 : vector<16xf32> to vector<16x1xf32>
    %245 = vector.broadcast %244 : vector<16x1xf32> to vector<16x16xf32>
    %246 = arith.subf %242, %245 : vector<16x16xf32>
    %247 = math.exp %246 : vector<16x16xf32>
    %cst_100 = arith.constant dense<0.000000e+00> : vector<16xf32>
    %248 = vector.multi_reduction <add>, %247, %cst_100 [1] : vector<16x16xf32> to vector<16xf32>
    %249 = vector.shape_cast %248 : vector<16xf32> to vector<16x1xf32>
    %250 = tpu.reciprocal %249 {approx = true} : vector<16x1xf32> -> vector<16x1xf32>
    %251 = vector.broadcast %250 : vector<16x1xf32> to vector<16x16xf32>
    %252 = arith.mulf %247, %251 : vector<16x16xf32>
    %253 = vector.extract_strided_slice %196 {offsets = [0, 16], sizes = [16, 8], strides = [1, 1]} : vector<16x32xf32> to vector<16x8xf32>
    %cst_101 = arith.constant dense<0.000000e+00> : vector<16x8xf32>
    %254 = tpu.matmul %252, %253, %cst_101 {dimension_numbers = #tpu.dot_dimension_numbers<[1], [0], [0], [1], [0, 0, 1, 1], [], []>} : vector<16x16xf32>, vector<16x8xf32>, vector<16x8xf32> -> vector<16x8xf32>
    %255 = vector.extract_strided_slice %199 {offsets = [16, 0], sizes = [8, 32], strides = [1, 1]} : vector<32x32xf32> to vector<8x32xf32>
    %cst_102 = arith.constant dense<0.000000e+00> : vector<16x32xf32>
    %256 = tpu.matmul %254, %255, %cst_102 {dimension_numbers = #tpu.dot_dimension_numbers<[1], [0], [0], [1], [0, 0, 1, 1], [], []>} : vector<16x8xf32>, vector<8x32xf32>, vector<16x32xf32> -> vector<16x32xf32>
    %257 = arith.addf %238, %256 : vector<16x32xf32>
    %258 = vector.extract_strided_slice %184 {offsets = [0, 24], sizes = [16, 8], strides = [1, 1]} : vector<16x32xf32> to vector<16x8xf32>
    %259 = vector.extract_strided_slice %197 {offsets = [24, 0], sizes = [8, 16], strides = [1, 1]} : vector<32x16xf32> to vector<8x16xf32>
    %cst_103 = arith.constant dense<0.000000e+00> : vector<16x16xf32>
    %260 = tpu.matmul %258, %259, %cst_103 {dimension_numbers = #tpu.dot_dimension_numbers<[1], [0], [0], [1], [0, 0, 1, 1], [], []>} : vector<16x8xf32>, vector<8x16xf32>, vector<16x16xf32> -> vector<16x16xf32>
    %261 = arith.addf %260, %8 : vector<16x16xf32>
    %cst_104 = arith.constant dense<0xFF800000> : vector<16xf32>
    %262 = vector.multi_reduction <maximumf>, %261, %cst_104 [1] : vector<16x16xf32> to vector<16xf32>
    %263 = vector.shape_cast %262 : vector<16xf32> to vector<16x1xf32>
    %264 = vector.broadcast %263 : vector<16x1xf32> to vector<16x16xf32>
    %265 = arith.subf %261, %264 : vector<16x16xf32>
    %266 = math.exp %265 : vector<16x16xf32>
    %cst_105 = arith.constant dense<0.000000e+00> : vector<16xf32>
    %267 = vector.multi_reduction <add>, %266, %cst_105 [1] : vector<16x16xf32> to vector<16xf32>
    %268 = vector.shape_cast %267 : vector<16xf32> to vector<16x1xf32>
    %269 = tpu.reciprocal %268 {approx = true} : vector<16x1xf32> -> vector<16x1xf32>
    %270 = vector.broadcast %269 : vector<16x1xf32> to vector<16x16xf32>
    %271 = arith.mulf %266, %270 : vector<16x16xf32>
    %272 = vector.extract_strided_slice %196 {offsets = [0, 24], sizes = [16, 8], strides = [1, 1]} : vector<16x32xf32> to vector<16x8xf32>
    %cst_106 = arith.constant dense<0.000000e+00> : vector<16x8xf32>
    %273 = tpu.matmul %271, %272, %cst_106 {dimension_numbers = #tpu.dot_dimension_numbers<[1], [0], [0], [1], [0, 0, 1, 1], [], []>} : vector<16x16xf32>, vector<16x8xf32>, vector<16x8xf32> -> vector<16x8xf32>
    %274 = vector.extract_strided_slice %199 {offsets = [24, 0], sizes = [8, 32], strides = [1, 1]} : vector<32x32xf32> to vector<8x32xf32>
    %cst_107 = arith.constant dense<0.000000e+00> : vector<16x32xf32>
    %275 = tpu.matmul %273, %274, %cst_107 {dimension_numbers = #tpu.dot_dimension_numbers<[1], [0], [0], [1], [0, 0, 1, 1], [], []>} : vector<16x8xf32>, vector<8x32xf32>, vector<16x32xf32> -> vector<16x32xf32>
    %276 = arith.addf %257, %275 : vector<16x32xf32>
    %277 = vector.extract_strided_slice %178 {offsets = [3, 0], sizes = [1, 32], strides = [1, 1]} : vector<16x32xf32> to vector<1x32xf32>
    %278 = vector.broadcast %277 : vector<1x32xf32> to vector<16x32xf32>
    %279 = arith.addf %276, %278 : vector<16x32xf32>
    %280 = arith.addf %176, %279 : vector<16x32xf32>
    %281 = vector.extract_strided_slice %178 {offsets = [5, 0], sizes = [1, 32], strides = [1, 1]} : vector<16x32xf32> to vector<1x32xf32>
    %282 = vector.extract_strided_slice %178 {offsets = [6, 0], sizes = [1, 32], strides = [1, 1]} : vector<16x32xf32> to vector<1x32xf32>
    %cst_108 = arith.constant dense<0.000000e+00> : vector<16xf32>
    %283 = vector.multi_reduction <add>, %280, %cst_108 [1] : vector<16x32xf32> to vector<16xf32>
    %284 = vector.shape_cast %283 : vector<16xf32> to vector<16x1xf32>
    %cst_109 = arith.constant 3.200000e+01 : f32
    %285 = vector.broadcast %cst_109 : f32 to vector<16x1xf32>
    %286 = arith.divf %284, %285 : vector<16x1xf32>
    %287 = vector.broadcast %286 : vector<16x1xf32> to vector<16x32xf32>
    %288 = arith.subf %280, %287 : vector<16x32xf32>
    %289 = arith.mulf %288, %288 : vector<16x32xf32>
    %cst_110 = arith.constant dense<0.000000e+00> : vector<16xf32>
    %290 = vector.multi_reduction <add>, %289, %cst_110 [1] : vector<16x32xf32> to vector<16xf32>
    %291 = vector.shape_cast %290 : vector<16xf32> to vector<16x1xf32>
    %cst_111 = arith.constant 3.200000e+01 : f32
    %292 = vector.broadcast %cst_111 : f32 to vector<16x1xf32>
    %293 = arith.divf %291, %292 : vector<16x1xf32>
    %294 = vector.broadcast %286 : vector<16x1xf32> to vector<16x32xf32>
    %295 = arith.subf %280, %294 : vector<16x32xf32>
    %cst_112 = arith.constant 9.99999974E-6 : f32
    %296 = vector.broadcast %cst_112 : f32 to vector<16x1xf32>
    %297 = arith.addf %293, %296 : vector<16x1xf32>
    %298 = math.rsqrt %297 : vector<16x1xf32>
    %299 = vector.broadcast %298 : vector<16x1xf32> to vector<16x32xf32>
    %300 = arith.mulf %295, %299 : vector<16x32xf32>
    %301 = vector.broadcast %281 : vector<1x32xf32> to vector<16x32xf32>
    %302 = arith.mulf %300, %301 : vector<16x32xf32>
    %303 = vector.broadcast %282 : vector<1x32xf32> to vector<16x32xf32>
    %304 = arith.addf %302, %303 : vector<16x32xf32>
    %c1_113 = arith.constant 1 : index
    %c0_114 = arith.constant 0 : index
    %c0_115 = arith.constant 0 : index
    %305 = vector.load %arg11[%c1_113, %c0_114, %c0_115] : memref<2x32x128xf32, #tpu.memory_space<vmem>>, vector<1x32x128xf32>
    %306 = vector.shape_cast %305 : vector<1x32x128xf32> to vector<32x128xf32>
    %cst_116 = arith.constant dense<0.000000e+00> : vector<16x128xf32>
    %307 = tpu.matmul %304, %306, %cst_116 {dimension_numbers = #tpu.dot_dimension_numbers<[1], [0], [0], [1], [0, 0, 1, 1], [], []>} : vector<16x32xf32>, vector<32x128xf32>, vector<16x128xf32> -> vector<16x128xf32>
    %c1_117 = arith.constant 1 : index
    %c0_118 = arith.constant 0 : index
    %c0_119 = arith.constant 0 : index
    %308 = vector.load %arg14[%c1_117, %c0_118, %c0_119] : memref<2x1x128xf32, #tpu.memory_space<vmem>>, vector<1x1x128xf32>
    %309 = vector.shape_cast %308 : vector<1x1x128xf32> to vector<1x128xf32>
    %310 = vector.broadcast %309 : vector<1x128xf32> to vector<16x128xf32>
    %311 = arith.addf %307, %310 : vector<16x128xf32>
    %cst_120 = arith.constant 0.000000e+00 : f32
    %312 = vector.broadcast %cst_120 : f32 to vector<16x128xf32>
    %313 = arith.maximumf %311, %312 : vector<16x128xf32>
    %c1_121 = arith.constant 1 : index
    %c0_122 = arith.constant 0 : index
    %c0_123 = arith.constant 0 : index
    %314 = vector.load %arg12[%c1_121, %c0_122, %c0_123] : memref<2x128x32xf32, #tpu.memory_space<vmem>>, vector<1x128x32xf32>
    %315 = vector.shape_cast %314 : vector<1x128x32xf32> to vector<128x32xf32>
    %cst_124 = arith.constant dense<0.000000e+00> : vector<16x32xf32>
    %316 = tpu.matmul %313, %315, %cst_124 {dimension_numbers = #tpu.dot_dimension_numbers<[1], [0], [0], [1], [0, 0, 1, 1], [], []>} : vector<16x128xf32>, vector<128x32xf32>, vector<16x32xf32> -> vector<16x32xf32>
    %317 = vector.extract_strided_slice %178 {offsets = [4, 0], sizes = [1, 32], strides = [1, 1]} : vector<16x32xf32> to vector<1x32xf32>
    %318 = vector.broadcast %317 : vector<1x32xf32> to vector<16x32xf32>
    %319 = arith.addf %316, %318 : vector<16x32xf32>
    %320 = arith.addf %304, %319 : vector<16x32xf32>
    %321 = vector.extract_strided_slice %178 {offsets = [7, 0], sizes = [1, 32], strides = [1, 1]} : vector<16x32xf32> to vector<1x32xf32>
    %322 = vector.extract_strided_slice %178 {offsets = [8, 0], sizes = [1, 32], strides = [1, 1]} : vector<16x32xf32> to vector<1x32xf32>
    %cst_125 = arith.constant dense<0.000000e+00> : vector<16xf32>
    %323 = vector.multi_reduction <add>, %320, %cst_125 [1] : vector<16x32xf32> to vector<16xf32>
    %324 = vector.shape_cast %323 : vector<16xf32> to vector<16x1xf32>
    %cst_126 = arith.constant 3.200000e+01 : f32
    %325 = vector.broadcast %cst_126 : f32 to vector<16x1xf32>
    %326 = arith.divf %324, %325 : vector<16x1xf32>
    %327 = vector.broadcast %326 : vector<16x1xf32> to vector<16x32xf32>
    %328 = arith.subf %320, %327 : vector<16x32xf32>
    %329 = arith.mulf %328, %328 : vector<16x32xf32>
    %cst_127 = arith.constant dense<0.000000e+00> : vector<16xf32>
    %330 = vector.multi_reduction <add>, %329, %cst_127 [1] : vector<16x32xf32> to vector<16xf32>
    %331 = vector.shape_cast %330 : vector<16xf32> to vector<16x1xf32>
    %cst_128 = arith.constant 3.200000e+01 : f32
    %332 = vector.broadcast %cst_128 : f32 to vector<16x1xf32>
    %333 = arith.divf %331, %332 : vector<16x1xf32>
    %334 = vector.broadcast %326 : vector<16x1xf32> to vector<16x32xf32>
    %335 = arith.subf %320, %334 : vector<16x32xf32>
    %cst_129 = arith.constant 9.99999974E-6 : f32
    %336 = vector.broadcast %cst_129 : f32 to vector<16x1xf32>
    %337 = arith.addf %333, %336 : vector<16x1xf32>
    %338 = math.rsqrt %337 : vector<16x1xf32>
    %339 = vector.broadcast %338 : vector<16x1xf32> to vector<16x32xf32>
    %340 = arith.mulf %335, %339 : vector<16x32xf32>
    %341 = vector.broadcast %321 : vector<1x32xf32> to vector<16x32xf32>
    %342 = arith.mulf %340, %341 : vector<16x32xf32>
    %343 = vector.broadcast %322 : vector<1x32xf32> to vector<16x32xf32>
    %344 = arith.addf %342, %343 : vector<16x32xf32>
    %c0_130 = arith.constant 0 : index
    %c0_131 = arith.constant 0 : index
    %345 = vector.load %arg15[%c0_130, %c0_131] : memref<32x128xf32, #tpu.memory_space<vmem>>, vector<32x128xf32>
    %cst_132 = arith.constant dense<0.000000e+00> : vector<16x128xf32>
    %346 = tpu.matmul %344, %345, %cst_132 {dimension_numbers = #tpu.dot_dimension_numbers<[1], [0], [0], [1], [0, 0, 1, 1], [], []>} : vector<16x32xf32>, vector<32x128xf32>, vector<16x128xf32> -> vector<16x128xf32>
    %c0_133 = arith.constant 0 : index
    %c0_134 = arith.constant 0 : index
    %347 = vector.load %arg2[%c0_133, %c0_134] : memref<16x6xf32, #tpu.memory_space<vmem>>, vector<16x6xf32>
    %c0_135 = arith.constant 0 : index
    %c0_136 = arith.constant 0 : index
    %348 = vector.load %arg16[%c0_135, %c0_136] : memref<6x128xf32, #tpu.memory_space<vmem>>, vector<6x128xf32>
    %cst_137 = arith.constant dense<0.000000e+00> : vector<16x128xf32>
    %349 = tpu.matmul %347, %348, %cst_137 {dimension_numbers = #tpu.dot_dimension_numbers<[1], [0], [0], [1], [0, 0, 1, 1], [], []>} : vector<16x6xf32>, vector<6x128xf32>, vector<16x128xf32> -> vector<16x128xf32>
    %350 = arith.addf %346, %349 : vector<16x128xf32>
    %c0_138 = arith.constant 0 : index
    %c0_139 = arith.constant 0 : index
    %351 = vector.load %arg17[%c0_138, %c0_139] : memref<1x128xf32, #tpu.memory_space<vmem>>, vector<1x128xf32>
    %352 = vector.broadcast %351 : vector<1x128xf32> to vector<16x128xf32>
    %353 = arith.addf %350, %352 : vector<16x128xf32>
    %c0_140 = arith.constant 0 : index
    %c0_141 = arith.constant 0 : index
    %354 = vector.load %arg18[%c0_140, %c0_141] : memref<16x128xf32, #tpu.memory_space<vmem>>, vector<16x128xf32>
    tpu.vector_store %arg18[%c0_140, %c0_141], %353 {strides = array<i32>} : memref<16x128xf32, #tpu.memory_space<vmem>>, vector<16x128xf32>,
    return
  }
  func.func @transform_0(%arg0: i32) -> (i32, i32) {
    %c0_i32 = arith.constant 0 : i32
    %c0_i32_0 = arith.constant 0 : i32
    return %arg0, %c0_i32 : i32, i32
  }
  func.func @transform_1(%arg0: i32) -> (i32, i32) {
    %c0_i32 = arith.constant 0 : i32
    %c0_i32_0 = arith.constant 0 : i32
    return %arg0, %c0_i32 : i32, i32
  }
  func.func @transform_2(%arg0: i32) -> (i32, i32) {
    %c0_i32 = arith.constant 0 : i32
    %c0_i32_0 = arith.constant 0 : i32
    %c0_i32_1 = arith.constant 0 : i32
    return %c0_i32, %c0_i32_0 : i32, i32
  }
  func.func @transform_3(%arg0: i32) -> (i32, i32) {
    %c0_i32 = arith.constant 0 : i32
    %c0_i32_0 = arith.constant 0 : i32
    %c0_i32_1 = arith.constant 0 : i32
    return %c0_i32, %c0_i32_0 : i32, i32
  }
  func.func @transform_4(%arg0: i32) -> (i32, i32) {
    %c0_i32 = arith.constant 0 : i32
    %c0_i32_0 = arith.constant 0 : i32
    %c0_i32_1 = arith.constant 0 : i32
    return %c0_i32, %c0_i32_0 : i32, i32
  }
  func.func @transform_5(%arg0: i32) -> (i32, i32) {
    %c0_i32 = arith.constant 0 : i32
    %c0_i32_0 = arith.constant 0 : i32
    %c0_i32_1 = arith.constant 0 : i32
    return %c0_i32, %c0_i32_0 : i32, i32
  }
  func.func @transform_6(%arg0: i32) -> (i32, i32, i32) {
    %c0_i32 = arith.constant 0 : i32
    %c0_i32_0 = arith.constant 0 : i32
    %c0_i32_1 = arith.constant 0 : i32
    %c0_i32_2 = arith.constant 0 : i32
    return %c0_i32, %c0_i32_0, %c0_i32_1 : i32, i32, i32
  }
  func.func @transform_7(%arg0: i32) -> (i32, i32, i32) {
    %c0_i32 = arith.constant 0 : i32
    %c0_i32_0 = arith.constant 0 : i32
    %c0_i32_1 = arith.constant 0 : i32
    %c0_i32_2 = arith.constant 0 : i32
    return %c0_i32, %c0_i32_0, %c0_i32_1 : i32, i32, i32
  }
  func.func @transform_8(%arg0: i32) -> (i32, i32, i32) {
    %c0_i32 = arith.constant 0 : i32
    %c0_i32_0 = arith.constant 0 : i32
    %c0_i32_1 = arith.constant 0 : i32
    %c0_i32_2 = arith.constant 0 : i32
    return %c0_i32, %c0_i32_0, %c0_i32_1 : i32, i32, i32
  }
  func.func @transform_9(%arg0: i32) -> (i32, i32, i32) {
    %c0_i32 = arith.constant 0 : i32
    %c0_i32_0 = arith.constant 0 : i32
    %c0_i32_1 = arith.constant 0 : i32
    %c0_i32_2 = arith.constant 0 : i32
    return %c0_i32, %c0_i32_0, %c0_i32_1 : i32, i32, i32
  }
  func.func @transform_10(%arg0: i32) -> (i32, i32, i32) {
    %c0_i32 = arith.constant 0 : i32
    %c0_i32_0 = arith.constant 0 : i32
    %c0_i32_1 = arith.constant 0 : i32
    %c0_i32_2 = arith.constant 0 : i32
    return %c0_i32, %c0_i32_0, %c0_i32_1 : i32, i32, i32
  }
  func.func @transform_11(%arg0: i32) -> (i32, i32, i32) {
    %c0_i32 = arith.constant 0 : i32
    %c0_i32_0 = arith.constant 0 : i32
    %c0_i32_1 = arith.constant 0 : i32
    %c0_i32_2 = arith.constant 0 : i32
    return %c0_i32, %c0_i32_0, %c0_i32_1 : i32, i32, i32
  }
  func.func @transform_12(%arg0: i32) -> (i32, i32, i32) {
    %c0_i32 = arith.constant 0 : i32
    %c0_i32_0 = arith.constant 0 : i32
    %c0_i32_1 = arith.constant 0 : i32
    %c0_i32_2 = arith.constant 0 : i32
    return %c0_i32, %c0_i32_0, %c0_i32_1 : i32, i32, i32
  }
  func.func @transform_13(%arg0: i32) -> (i32, i32, i32) {
    %c0_i32 = arith.constant 0 : i32
    %c0_i32_0 = arith.constant 0 : i32
    %c0_i32_1 = arith.constant 0 : i32
    %c0_i32_2 = arith.constant 0 : i32
    return %c0_i32, %c0_i32_0, %c0_i32_1 : i32, i32, i32
  }
  func.func @transform_14(%arg0: i32) -> (i32, i32) {
    %c0_i32 = arith.constant 0 : i32
    %c0_i32_0 = arith.constant 0 : i32
    %c0_i32_1 = arith.constant 0 : i32
    return %c0_i32, %c0_i32_0 : i32, i32
  }
  func.func @transform_15(%arg0: i32) -> (i32, i32) {
    %c0_i32 = arith.constant 0 : i32
    %c0_i32_0 = arith.constant 0 : i32
    %c0_i32_1 = arith.constant 0 : i32
    return %c0_i32, %c0_i32_0 : i32, i32
  }
  func.func @transform_16(%arg0: i32) -> (i32, i32) {
    %c0_i32 = arith.constant 0 : i32
    %c0_i32_0 = arith.constant 0 : i32
    %c0_i32_1 = arith.constant 0 : i32
    return %c0_i32, %c0_i32_0 : i32, i32
  }
  func.func @transform_17(%arg0: i32) -> (i32, i32) {
    %c0_i32 = arith.constant 0 : i32
    %c0_i32_0 = arith.constant 0 : i32
    return %arg0, %c0_i32 : i32, i32
  }
}

</mosaic_0001>

<bundles_post_ra>
// kernel: forward.3
= control target key start
LH: loop header
LB: loop body
LE: loop exit
PB: predicated region body
PF: predicated region fallthrough
CT: control target
= control target key end

     0   :  { %vm68_vm0 = vcmask 154624   ;;  %vm75_vm1 = vcmask 1042432   ;;  %vm170_vm2 = vcmask 261120   ;;  %v166_v33 = vlaneseq  ;;  %s4704_s21 = smov 120   ;;  %s4706_s27 = smov 104   ;;  %s5456_s4 = inlined_call_operand.vmem [shape: f32[19,32], index: 4, kind: input, shape index: {}]   ;;  %s5457_s0 = inlined_call_operand.vmem [shape: f32[16,19], index: 0, kind: input, shape index: {}]   ;;  %s5458_s6 = inlined_call_operand.vmem [shape: f32[2,32,32], index: 6, kind: input, shape index: {}]   ;;  %s5459_s7 = inlined_call_operand.vmem [shape: f32[2,32,32], index: 7, kind: input, shape index: {}]   ;;  %s5460_s5 = inlined_call_operand.vmem [shape: f32[1,32], index: 5, kind: input, shape index: {}]   ;;  %s5461_s2 = inlined_call_operand.vmem [shape: f32[16,32], index: 2, kind: input, shape index: {}]   ;;  %s5462_s8 = inlined_call_operand.vmem [shape: f32[2,32,32], index: 8, kind: input, shape index: {}]   ;;  %s5463_s12 = inlined_call_operand.vmem [shape: f32[2,16,32], index: 12, kind: input, shape index: {}]   ;;  %s5464_s3 = inlined_call_operand.vmem [shape: f32[16,16], index: 3, kind: input, shape index: {}]   ;;  %s5465_s9 = inlined_call_operand.vmem [shape: f32[2,32,32], index: 9, kind: input, shape index: {}]   ;;  %s5466_s10 = inlined_call_operand.vmem [shape: f32[2,32,128], index: 10, kind: input, shape index: {}]   ;;  %s5467_s11 = inlined_call_operand.vmem [shape: f32[2,128,32], index: 11, kind: input, shape index: {}]   ;;  %s5468_s13 = inlined_call_operand.vmem [shape: f32[2,1,128], index: 13, kind: input, shape index: {}]   ;;  %s5469_s15 = inlined_call_operand.vmem [shape: f32[6,128], index: 15, kind: input, shape index: {}]   ;;  %s5470_s14 = inlined_call_operand.vmem [shape: f32[32,128], index: 14, kind: input, shape index: {}]   ;;  %s5471_s1 = inlined_call_operand.vmem [shape: f32[16,6], index: 1, kind: input, shape index: {}]   ;;  %s5472_s16 = inlined_call_operand.vmem [shape: f32[1,128], index: 16, kind: input, shape index: {}]   ;;  %s5473_s17 = inlined_call_operand.vmem [shape: f32[16,128], index: 17, kind: output, shape index: {}]  }
   0x1   :  { %5476 = sst [smem:[#allocation2_spill]] %s5456_s4  ;;  %v162_v4 = vld [vmem:[%s5458_s6] sm:$0xff]  ;;  %v163_v6 = vld [vmem:[%s5458_s6 + $0x8] sm:$0xff]  ;;  %v164_v9 = vld [vmem:[%s5458_s6 + $0x10] sm:$0xff]  ;;  %vm422_vm3 = vcmask 64512   ;;  %vm510_vm5 = vcmask 130048  }
   0x2   :  { %5477 = sst [smem:[#allocation3_spill]] %s5457_s0  ;;  %s5478_s26 = sld [smem:[#allocation2_spill]]  ;;  %v4329_v7 = vpack.c.bf16 %v163_v6, %v162_v4  ;;  %v165_v10 = vld [vmem:[%s5458_s6 + $0x18] sm:$0xff]  ;;  %v252_v12 = vld [vmem:[%s5459_s7] sm:$0xff]  ;;  %v253_v13 = vld [vmem:[%s5459_s7 + $0x8] sm:$0xff]  ;;  %v4875_v34 = vshrl.u32 %v166_v33, 7 }
   0x3   :  { %s5479_s30 = sld [smem:[#allocation3_spill]]  ;;  %v4333_v11 = vpack.c.bf16 %v165_v10, %v164_v9  ;;  %v4337_v14 = vpack.c.bf16 %v253_v13, %v252_v12  ;;  %v3673_v15 = vld [vmem:[%s5460_s5] ss:$0 sm:$0xff]  ;;  %v155_v20 = vld [vmem:[%s5461_s2 + $0x8] sm:$0xff]  ;;  %v254_v22 = vld [vmem:[%s5459_s7 + $0x10] sm:$0xff]  ;;  %vm3498_vm6 = vcmask 1045504  }
   0x4   :  { %4330 = vmatprep.subr.bf16.mxu1 %v4329_v7  ;;  %v154_v19 = vld [vmem:[%s5461_s2] sm:$0xff]  ;;  %v255_v23 = vld [vmem:[%s5459_s7 + $0x18] sm:$0xff]  ;;  %v336_v28 = vld [vmem:[%s5462_s8 + $0x8] sm:$0xff]  ;;  %v4878_v35 = vsub.s32 0, %v4875_v34  ;;  %v258_v40 = vsub.s32 1, %v4875_v34  ;;  %v341_v46 = vsub.s32 2, %v4875_v34 }
   0x5   :  { %4332 = vmatpush3.bf16.msra.mxu1 %v4329_v7  ;;  %v4341_v26 = vpack.c.bf16 %v255_v23, %v254_v22  ;;  %v335_v27 = vld [vmem:[%s5462_s8] sm:$0xff]  ;;  %v337_v30 = vld [vmem:[%s5462_s8 + $0x10] sm:$0xff]  ;;  %v338_v31 = vld [vmem:[%s5462_s8 + $0x18] sm:$0xff]  ;;  %vm3491_vm7 = vcmask 48128  }
   0x6   :  { %4334 = vmatprep.subr.bf16.mxu1 %v4333_v11  ;;  %v4345_v29 = vpack.c.bf16 %v336_v28, %v335_v27  ;;  %v4349_v32 = vpack.c.bf16 %v338_v31, %v337_v30  ;;  %v4883_v36 = vld [vmem:[%s5463_s12] sm:$0xff]  ;;  %vm4900_vm4 = vmpackc.low %vm422_vm3, %vm422_vm3  ;;  %v4927_v61 = vld [vmem:[%s5464_s3 + $0x8] sm:$0xff] }
   0x7   :  { %v169_v37 = vrot.slane %v4883_v36, %v4878_v35  ;;  %v259_v42 = vrot.slane %v4883_v36, %v258_v40  ;;  %v342_v51 = vrot.slane %v4883_v36, %v341_v46  ;;  %v4922_v59 = vld [vmem:[%s5464_s3] sm:$0xff] }
   0x8   :  { %v58_v0 = vld [vmem:[%s5478_s26] sm:$0xff]  ;;  %v59_v1 = vld [vmem:[%s5478_s26 + $0x8] sm:$0xff]  ;;  %v60_v5 = vld [vmem:[%s5478_s26 + $0x10] sm:$0x7]  ;;  %s4705_s26 = smov 112  }
   0x9   :  { %v4325_v2 = vpack.c.bf16 %v59_v1, %v58_v0  ;;  %v56_v3 = vld [vmem:[%s5479_s30] sm:$0xff]  ;;  %v57_v8 = vld [vmem:[%s5479_s30 + $0x8] sm:$0xff]  ;;  %4336 = vmatpush3.bf16.msra.mxu1 %v4333_v11 }
   0xa   :  { %3996 = vmatprep.mubr.msk.f32.mxu0 %vm68_vm0, %v56_v3  ;;  %4338 = vmatprep.subr.bf16.mxu1 %v4337_v14 }
   0xb   :  { %4326 = vmatprep.subr.bf16.mxu0 %v4325_v2 }
   0xc   :  { %4328 = vmatpush3.bf16.msra.mxu0 %v4325_v2 }
   0xd   :  { %3994 = vmatprep.subr.msk.mxu0 %vm75_vm1, %v60_v5 }
  0x10   :  { %3995 = vmatpush3.msk.msra.mxu0 %vm75_vm1, %v60_v5 }
  0x11   :  { %3997 = vmatmul.mubr.msk.f32.vlgmr.msra.gmra.mrb[0].mxu0 %vm68_vm0, %v57_v8 }
  0xe4   :  { %v3998_v16 = vpop.f32.mrb[0].mxu0 }
  0xe5   :  { %v151_v17 = vadd.f32 %v3998_v16, %v3673_v15  ;;  %v145_v18 = vpop.f32.mrb[1].mxu0 }
  0xe6   :  { %v146_v21 = vadd.f32 %v3673_v15, %v145_v18 }
  0xe7   :  { %v4849_v25 = vadd.f32 %v155_v20, %v151_v17 }
  0xe8   :  { %v4847_v24 = vadd.f32 %v154_v19, %v146_v21 }
  0xea   :  { %4007 = vmatprep.mubr.msk.f32.mxu1 %vm170_vm2, %v4847_v24 }
  0xeb   :  { %4008 = vmatmul.mubr.msk.f32.vlgmr.msra.gmra.mrb[0].mxu1 %vm170_vm2, %v4849_v25 }
  0xec   :  { %4340 = vmatpush3.bf16.msra.mxu1 %v4337_v14  ;;  %4018 = vmatprep.mubr.msk.f32.mxu1 %vm170_vm2, %v4847_v24 }
  0xed   :  { %4342 = vmatprep.subr.bf16.mxu1 %v4341_v26 }
  0xf0   :  { %4344 = vmatpush3.bf16.msra.mxu1 %v4341_v26 }
  0xf1   :  { %4346 = vmatprep.subr.bf16.mxu1 %v4345_v29 }
  0xf3   :  { %4019 = vmatmul.mubr.msk.f32.vlgmr.msra.gmra.mrb[2].mxu1 %vm170_vm2, %v4849_v25 }
  0xf4   :  { %4348 = vmatpush3.bf16.msra.mxu1 %v4345_v29  ;;  %4029 = vmatprep.mubr.msk.f32.mxu1 %vm170_vm2, %v4847_v24 }
  0xf5   :  { %4350 = vmatprep.subr.bf16.mxu1 %v4349_v32 }
  0xf8   :  { %4352 = vmatpush3.bf16.msra.mxu1 %v4349_v32 }
  0xfb   :  { %4030 = vmatmul.mubr.msk.f32.vlgmr.msra.gmra.mrb[4].mxu1 %vm170_vm2, %v4849_v25 }
 0x1be   :  { %v4009_v38 = vpop.f32.mrb[0].mxu1 }
 0x1bf   :  { %v243_v39 = vpop.f32.mrb[1].mxu1  ;;  %v4913_v56 = vadd.f32 %v4009_v38, %v169_v37 }
 0x1c0   :  { %v4888_v41 = vadd.f32 %v243_v39, %v169_v37 }
 0x1c2   :  { %614 = vrot.lane.b32.xlu1 %v4888_v41, %s4704_s21  ;;  %4036 = vmatprep.mubr.msk.f32.mxu0 %vm422_vm3, %v4888_v41 }
 0x1c6   :  { %v4020_v43 = vpop.f32.mrb[2].mxu1 }
 0x1c7   :  { %v332_v44 = vadd.f32 %v4020_v43, %v259_v42  ;;  %v326_v45 = vpop.f32.mrb[3].mxu1 }
 0x1c8   :  { %v327_v47 = vadd.f32 %v326_v45, %v259_v42 }
 0x1ca   :  { %v4353_v49 = vpack.c.bf16 %v332_v44, %v327_v47  ;;  %v4904_v50 = vpack.i.bf16 %v332_v44, %v327_v47 }
 0x1cc   :  { %4355 = vmatprep.subr.msk.bf16.mxu0 %vm4900_vm4, %v4353_v49 }
 0x1cd   :  { %4358 = vmatpush3.bf16.xpose.msk.msra.mxu0 %vm4900_vm4, %v4353_v49 }
 0x1ce   :  { %v4031_v52 = vpop.f32.mrb[4].mxu1 }
 0x1cf   :  { %v415_v53 = vadd.f32 %v4031_v52, %v342_v51  ;;  %v409_v54 = vpop.f32.mrb[5].mxu1 }
 0x1d0   :  { %v410_v55 = vadd.f32 %v409_v54, %v342_v51 }
 0x1d2   :  { %v4359_v57 = vpack.c.bf16 %v415_v53, %v410_v55  ;;  %v4915_v58 = vpack.i.bf16 %v415_v53, %v410_v55 }
 0x1d4   :  { %4037 = vmatmul.mubr.msk.f32.vlgmr.msra.gmra.mrb[2].mxu0 %vm422_vm3, %v4913_v56  ;;  %4360 = vmatprep.subr.bf16.mxu1 %v4359_v57 }
 0x1d5   :  { %4362 = vmatpush3.bf16.msra.mxu1 %v4359_v57 }
 0x234   :  { %v615_v17 = vpop.permute.xlu1 %614 }
 0x2a7   :  { %v4038_v60 = vpop.f32.mrb[2].mxu0 }
 0x2a8   :  { %v501_v62 = vpop.f32.mrb[3].mxu0  ;;  %v507_v0 = vadd.f32 %v4038_v60, %v4927_v61 }
 0x2a9   :  { %v502_v63 = vadd.f32 %v501_v62, %v4922_v59 }
 0x2aa   :  { %v514_v2 = vsel %vm510_vm5, %v507_v0, -inf }
 0x2ab   :  { %v511_v1 = vsel %vm510_vm5, %v502_v63, -inf }
 0x2ac   :  { %512 = vmax.xlane.f32.xlu0 %v511_v1 }
 0x2b0   :  { %515 = vmax.xlane.f32.xlu0 %v514_v2 }
 0x2c6   :  { %4563 = vrot.lane.b32.xlu0 %v4904_v50, %s4704_s21 }
 0x2ca   :  { %978 = vrot.lane.b32.xlu0 %v4888_v41, %s4705_s26 }
 0x339   :  { %v513_v3 = vpop.xlane.xlu0 %512 }
 0x33a   :  { %v517_v4 = vsub.f32 %v502_v63, %v513_v3 }
 0x33c   :  { %v519_v7 = vmul.f32 1.442695, %v517_v4 }
 0x33d   :  { %v516_v5 = vpop.xlane.xlu0 %515 }
 0x33e   :  { %v518_v6 = vsub.f32 %v507_v0, %v516_v5 }
 0x340   :  { %v521_v8 = vmul.f32 1.442695, %v518_v6 }
 0x341   :  { %v4564_v9 = vpop.permute.xlu0 %4563 }
 0x342   :  { %4622 = vpow2.f32 %v521_v8  ;;  %v4566_v10 = vunpack.i.h.bf16 %v4564_v9  ;;  %v4565_v11 = vunpack.i.l.bf16 %v4564_v9 }
 0x343   :  { %4624 = vpow2.f32 %v519_v7 }
 0x344   :  { %v4363_v12 = vpack.c.bf16 %v4566_v10, %v4565_v11 }
 0x345   :  { %v979_v31 = vpop.permute.xlu0 %978 }
 0x346   :  { %4365 = vmatprep.subr.msk.bf16.mxu1 %vm4900_vm4, %v4363_v12 }
 0x34c   :  { %v4623_v13 = vpop.eup %4622 }
 0x34d   :  { %v526_v14 = vsel %vm510_vm5, %v4623_v13, 0.0  ;;  %v4625_v15 = vpop.eup %4624 }
 0x34e   :  { %527 = vadd.xlane.f32.xlu1 %v526_v14  ;;  %v523_v16 = vsel %vm510_vm5, %v4625_v15, 0.0 }
 0x352   :  { %524 = vadd.xlane.f32.xlu1 %v523_v16 }
 0x363   :  { %616 = vrot.lane.b32.xlu1 %v4913_v56, %s4704_s21 }
 0x367   :  { %4568 = vrot.lane.b32.xlu1 %v4904_v50, %s4705_s26 }
 0x36b   :  { %980 = vrot.lane.b32.xlu1 %v4913_v56, %s4705_s26 }
 0x3db   :  { %v528_v18 = vpop.xlane.xlu1 %527 }
 0x3dc   :  { %4626 = vrcp.f32 %v528_v18 }
 0x3df   :  { %v525_v19 = vpop.xlane.xlu1 %524 }
 0x3e0   :  { %4628 = vrcp.f32 %v525_v19 }
 0x3e3   :  { %v617_v20 = vpop.permute.xlu1 %616 }
 0x3e6   :  { %v4627_v22 = vpop.eup %4626 }
 0x3e7   :  { %v4569_v21 = vpop.permute.xlu1 %4568  ;;  %v532_v29 = vmul.f32 %v4627_v22, %v4623_v13 }
 0x3e8   :  { %v4571_v26 = vunpack.i.h.bf16 %v4569_v21  ;;  %v4570_v27 = vunpack.i.l.bf16 %v4569_v21 }
 0x3ea   :  { %v4629_v23 = vpop.eup %4628  ;;  %v4373_v30 = vpack.c.bf16 %v4571_v26, %v4570_v27 }
 0x3eb   :  { %v531_v28 = vmul.f32 %v4629_v23, %v4625_v15  ;;  %v981_v32 = vpop.permute.xlu1 %980 }
 0x3ed   :  { %4043 = vmatprep.mubr.msk.f32.mxu1 %vm510_vm5, %v531_v28 }
 0x3ee   :  { %4044 = vmatmul.mubr.msk.f32.vlgmr.msra.gmra.mrb[6].mxu1 %vm510_vm5, %v532_v29 }
 0x3ef   :  { %4368 = vmatpush3.bf16.xpose.msk.msra.mxu1 %vm4900_vm4, %v4363_v12  ;;  %4050 = vmatprep.mubr.msk.f32.mxu1 %vm422_vm3, %v615_v17 }
 0x3f0   :  { %4375 = vmatprep.subr.msk.bf16.mxu1 %vm4900_vm4, %v4373_v30 }
 0x3f6   :  { %4051 = vmatmul.mubr.msk.f32.vlgmr.msra.gmra.mrb[8].mxu1 %vm422_vm3, %v617_v20 }
 0x3f7   :  { %4378 = vmatpush3.bf16.xpose.msk.msra.mxu1 %vm4900_vm4, %v4373_v30  ;;  %4074 = vmatprep.mubr.msk.f32.mxu1 %vm422_vm3, %v979_v31 }
 0x3fe   :  { %4075 = vmatmul.mubr.msk.f32.vlgmr.msra.gmra.mrb[10].mxu1 %vm422_vm3, %v981_v32 }
 0x4c1   :  { %v4959_v33 = vpop.f32.mrb[6].mxu1 }
 0x4c2   :  { %v4961_v37 = vpop.f32.mrb[7].mxu1 }
 0x4c9   :  { %v4052_v38 = vpop.f32.mrb[8].mxu1 }
 0x4ca   :  { %v702_v39 = vadd.f32 %v4052_v38, %v4927_v61  ;;  %v696_v42 = vpop.f32.mrb[9].mxu1 }
 0x4cb   :  { %v697_v43 = vadd.f32 %v696_v42, %v4922_v59 }
 0x4cc   :  { %v708_v44 = vsel %vm510_vm5, %v702_v39, -inf }
 0x4cd   :  { %709 = vmax.xlane.f32.xlu1 %v708_v44  ;;  %v705_v45 = vsel %vm510_vm5, %v697_v43, -inf  ;;  %v418_v44 = vld [vmem:[%s5465_s9] sm:$0xff] }
 0x4ce   :  { %706 = vmax.xlane.f32.xlu0 %v705_v45 }
 0x4d1   :  { %v4076_v47 = vpop.f32.mrb[10].mxu1 }
 0x4d2   :  { %v1060_v49 = vpop.f32.mrb[11].mxu1  ;;  %v1066_v51 = vadd.f32 %v4076_v47, %v4927_v61 }
 0x4d3   :  { %v1061_v9 = vadd.f32 %v1060_v49, %v4922_v59 }
 0x4d4   :  { %v1072_v52 = vsel %vm510_vm5, %v1066_v51, -inf }
 0x4d5   :  { %v1069_v10 = vsel %vm510_vm5, %v1061_v9, -inf }
 0x4de   :  { %4578 = vrot.lane.b32.xlu1 %v4904_v50, %s4706_s27 }
 0x4e2   :  { %1261 = vrot.lane.b32.xlu1 %v4888_v41, %s4706_s27 }
 0x4e6   :  { %1263 = vrot.lane.b32.xlu1 %v4913_v56, %s4706_s27 }
 0x50a   :  { %1073 = vmax.xlane.f32.xlu1 %v1072_v52 }
 0x55a   :  { %v710_v53 = vpop.xlane.xlu1 %709 }
 0x55b   :  { %v712_v54 = vsub.f32 %v702_v39, %v710_v53  ;;  %v707_v55 = vpop.xlane.xlu0 %706 }
 0x55c   :  { %v711_v57 = vsub.f32 %v697_v43, %v707_v55  ;;  %v419_v43 = vld [vmem:[%s5465_s9 + $0x8] sm:$0xff] }
 0x55d   :  { %v715_v60 = vmul.f32 1.442695, %v712_v54 }
 0x55e   :  { %v713_v62 = vmul.f32 1.442695, %v711_v57  ;;  %v4579_v63 = vpop.permute.xlu1 %4578 }
 0x55f   :  { %4630 = vpow2.f32 %v715_v60  ;;  %v4581_v50 = vunpack.i.h.bf16 %v4579_v63  ;;  %v4580_v0 = vunpack.i.l.bf16 %v4579_v63 }
 0x560   :  { %4632 = vpow2.f32 %v713_v62 }
 0x561   :  { %v4383_v41 = vpack.c.bf16 %v4581_v50, %v4580_v0 }
 0x562   :  { %v1262_v1 = vpop.permute.xlu1 %1261 }
 0x563   :  { %4385 = vmatprep.subr.msk.bf16.mxu1 %vm4900_vm4, %v4383_v41  ;;  %4093 = vmatprep.mubr.msk.f32.mxu1 %vm422_vm3, %v1262_v1 }
 0x564   :  { %4388 = vmatpush3.bf16.xpose.msk.msra.mxu1 %vm4900_vm4, %v4383_v41 }
 0x566   :  { %v1264_v2 = vpop.permute.xlu1 %1263 }
 0x569   :  { %v4631_v56 = vpop.eup %4630 }
 0x56a   :  { %v720_v3 = vsel %vm510_vm5, %v4631_v56, 0.0  ;;  %v4633_v4 = vpop.eup %4632 }
 0x56b   :  { %4094 = vmatmul.mubr.msk.f32.vlgmr.msra.gmra.mrb[12].mxu1 %vm422_vm3, %v1264_v2  ;;  %721 = vadd.xlane.f32.xlu0 %v720_v3  ;;  %v717_v5 = vsel %vm510_vm5, %v4633_v4, 0.0 }
 0x56f   :  { %718 = vadd.xlane.f32.xlu0 %v717_v5 }
 0x585   :  { %4573 = vrot.lane.b32.xlu0 %v4915_v58, %s4704_s21 }
 0x597   :  { %v1074_v6 = vpop.xlane.xlu1 %1073 }
 0x598   :  { %v1076_v7 = vsub.f32 %v1066_v51, %v1074_v6  ;;  %v420_v6 = vld [vmem:[%s5465_s9 + $0x10] sm:$0xff] }
 0x59a   :  { %v1079_v8 = vmul.f32 1.442695, %v1076_v7 }
 0x59c   :  { %4634 = vpow2.f32 %v1079_v8 }
 0x5a4   :  { %1070 = vmax.xlane.f32.xlu0 %v1069_v10 }
 0x5a6   :  { %v4987_v11 = vpop.eup %4634 }
 0x5a7   :  { %v1084_v12 = vsel %vm510_vm5, %v4987_v11, 0.0 }
 0x5a8   :  { %1085 = vadd.xlane.f32.xlu0 %v1084_v12 }
 0x5f8   :  { %v722_v13 = vpop.xlane.xlu0 %721 }
 0x5f9   :  { %4636 = vrcp.f32 %v722_v13 }
 0x5fc   :  { %v719_v14 = vpop.xlane.xlu0 %718 }
 0x5fd   :  { %4638 = vrcp.f32 %v719_v14 }
 0x600   :  { %v4574_v15 = vpop.permute.xlu0 %4573 }
 0x601   :  { %v4576_v16 = vunpack.i.h.bf16 %v4574_v15  ;;  %v4575_v17 = vunpack.i.l.bf16 %v4574_v15 }
 0x603   :  { %v4369_v18 = vpack.c.bf16 %v4576_v16, %v4575_v17  ;;  %v4637_v19 = vpop.eup %4636  ;;  %v421_v16 = vld [vmem:[%s5465_s9 + $0x18] sm:$0xff] }
 0x604   :  { %v726_v22 = vmul.f32 %v4637_v19, %v4631_v56 }
 0x605   :  { %4370 = vmatprep.subr.bf16.mxu0 %v4369_v18 }
 0x606   :  { %4372 = vmatpush3.bf16.msra.mxu0 %v4369_v18 }
 0x607   :  { %v4639_v20 = vpop.eup %4638  ;;  %4060 = vmatprep.subr.mxu0 %v419_v43 }
 0x608   :  { %v725_v21 = vmul.f32 %v4639_v20, %v4633_v4  ;;  %v1546_v20 = vsub.s32 3, %v4875_v34 }
 0x60a   :  { %4057 = vmatprep.mubr.msk.f32.mxu0 %vm510_vm5, %v725_v21  ;;  %v1547_v21 = vrot.slane %v4883_v36, %v1546_v20 }
 0x60b   :  { %4058 = vmatmul.mubr.msk.f32.vlgmr.msra.gmra.mrb[4].mxu0 %vm510_vm5, %v726_v22 }
 0x60c   :  { %4061 = vmatpush3.msra.mxu0 %v419_v43 }
 0x60d   :  { %4065 = vmatprep.subr.mxu0 %v418_v44 }
 0x631   :  { %v1071_v23 = vpop.xlane.xlu0 %1070 }
 0x632   :  { %v1075_v26 = vsub.f32 %v1061_v9, %v1071_v23 }
 0x634   :  { %v1077_v27 = vmul.f32 1.442695, %v1075_v26 }
 0x635   :  { %v1086_v45 = vpop.xlane.xlu0 %1085 }
 0x636   :  { %4640 = vpow2.f32 %v1077_v27 }
 0x63e   :  { %v4095_v28 = vpop.f32.mrb[12].mxu1 }
 0x63f   :  { %v1343_v29 = vpop.f32.mrb[13].mxu1  ;;  %v1349_v38 = vadd.f32 %v4095_v28, %v4927_v61 }
 0x640   :  { %v4641_v30 = vpop.eup %4640  ;;  %v1344_v31 = vadd.f32 %v1343_v29, %v4922_v59 }
 0x641   :  { %v1081_v32 = vsel %vm510_vm5, %v4641_v30, 0.0  ;;  %v1355_v42 = vsel %vm510_vm5, %v1349_v38, -inf }
 0x642   :  { %1082 = vadd.xlane.f32.xlu0 %v1081_v32  ;;  %v1352_v39 = vsel %vm510_vm5, %v1344_v31, -inf }
 0x643   :  { %1353 = vmax.xlane.f32.xlu1 %v1352_v39 }
 0x647   :  { %1356 = vmax.xlane.f32.xlu1 %v1355_v42 }
 0x658   :  { %4583 = vrot.lane.b32.xlu0 %v4915_v58, %s4705_s26 }
 0x6cf   :  { %v1083_v51 = vpop.xlane.xlu0 %1082 }
 0x6d0   :  { %v1354_v47 = vpop.xlane.xlu1 %1353 }
 0x6d1   :  { %v1358_v49 = vsub.f32 %v1344_v31, %v1354_v47 }
 0x6d3   :  { %v1360_v54 = vmul.f32 1.442695, %v1358_v49  ;;  %v4584_v57 = vpop.permute.xlu0 %4583  ;;  %v1591_v49 = vld [vmem:[%s5466_s10] sm:$0xff] }
 0x6d4   :  { %v1357_v52 = vpop.xlane.xlu1 %1356  ;;  %v4586_v60 = vunpack.i.h.bf16 %v4584_v57  ;;  %v4585_v62 = vunpack.i.l.bf16 %v4584_v57  ;;  %v1685_v57 = vld [vmem:[%s5467_s11] sm:$0xff] }
 0x6d5   :  { %v1359_v53 = vsub.f32 %v1349_v38, %v1357_v52 }
 0x6d6   :  { %v4379_v0 = vpack.c.bf16 %v4586_v60, %v4585_v62  ;;  %v1686_v60 = vld [vmem:[%s5467_s11 + $0x8] sm:$0xff]  ;;  %v1687_v62 = vld [vmem:[%s5467_s11 + $0x10] sm:$0xff] }
 0x6d7   :  { %v1362_v55 = vmul.f32 1.442695, %v1359_v53  ;;  %v1593_v53 = vld [vmem:[%s5466_s10 + $0x10] sm:$0xff] }
 0x6d9   :  { %4642 = vpow2.f32 %v1362_v55 }
 0x6da   :  { %4644 = vrcp.f32 %v1083_v51  ;;  %v1592_v51 = vld [vmem:[%s5466_s10 + $0x8] sm:$0xff] }
 0x6db   :  { %4646 = vpow2.f32 %v1360_v54  ;;  %v4393_v52 = vpack.c.bf16 %v1592_v51, %v1591_v49  ;;  %v1594_v54 = vld [vmem:[%s5466_s10 + $0x18] sm:$0xff]  ;;  %v1703_v49 = vsub.s32 4, %v4875_v34 }
 0x6dc   :  { %4648 = vrcp.f32 %v1086_v45  ;;  %v4397_v55 = vpack.c.bf16 %v1594_v54, %v1593_v53 }
 0x6dd   :  { %4394 = vmatprep.subr.bf16.mxu1 %v4393_v52  ;;  %v1704_v51 = vrot.slane %v4883_v36, %v1703_v49 }
 0x6de   :  { %v4059_v63 = vpop.f32.mrb[4].mxu0  ;;  %4396 = vmatpush3.bf16.msra.mxu1 %v4393_v52 }
 0x6df   :  { %v807_v50 = vpop.f32.mrb[5].mxu0  ;;  %4398 = vmatprep.subr.bf16.mxu1 %v4397_v55 }
 0x6e0   :  { %4062 = vmatprep.mubr.msk.f32.mxu0 %vm422_vm3, %v807_v50  ;;  %v1688_v50 = vld [vmem:[%s5467_s11 + $0x18] sm:$0xff] }
 0x6e1   :  { %4063 = vmatmul.mubr.msk.f32.vlgmr.msra.gmra.mrb[6].mxu0 %vm422_vm3, %v4059_v63  ;;  %v4401_v63 = vpack.c.bf16 %v1686_v60, %v1685_v57 }
 0x6e2   :  { %4066 = vmatpush3.msra.mxu0 %v418_v44  ;;  %4067 = vmatprep.mubr.msk.f32.mxu0 %vm422_vm3, %v4961_v37 }
 0x6e3   :  { %v4643_v41 = vpop.eup %4642  ;;  %4380 = vmatprep.subr.bf16.mxu0 %v4379_v0  ;;  %4400 = vmatpush3.bf16.msra.mxu1 %v4397_v55 }
 0x6e4   :  { %v4645_v1 = vpop.eup %4644  ;;  %v1367_v56 = vsel %vm510_vm5, %v4643_v41, 0.0 }
 0x6e5   :  { %v4647_v2 = vpop.eup %4646  ;;  %1368 = vadd.xlane.f32.xlu1 %v1367_v56  ;;  %v1089_v5 = vmul.f32 %v4645_v1, %v4641_v30  ;;  %v1690_v1 = vld [vmem:[%s5467_s11 + $0x28] sm:$0xff] }
 0x6e6   :  { %v4649_v3 = vpop.eup %4648  ;;  %v1364_v4 = vsel %vm510_vm5, %v4647_v2, 0.0 }
 0x6e7   :  { %v1090_v37 = vmul.f32 %v4649_v3, %v4987_v11  ;;  %v1692_v3 = vld [vmem:[%s5467_s11 + $0x38] sm:$0xff] }
 0x6e9   :  { %1365 = vadd.xlane.f32.xlu1 %v1364_v4  ;;  %4068 = vmatmul.mubr.msk.f32.vlgmr.msra.gmra.mrb[6].mxu0 %vm422_vm3, %v4959_v33 }
 0x6ea   :  { %4382 = vmatpush3.bf16.msra.mxu0 %v4379_v0  ;;  %4081 = vmatprep.mubr.msk.f32.mxu0 %vm510_vm5, %v1089_v5  ;;  %v4405_v0 = vpack.c.bf16 %v1688_v50, %v1687_v62  ;;  %v1693_v5 = vld [vmem:[%s5467_s11 + $0x40] sm:$0xff] }
 0x6eb   :  { %4084 = vmatprep.subr.mxu0 %v420_v6 }
 0x6ed   :  { %4082 = vmatmul.mubr.msk.f32.vlgmr.msra.gmra.mrb[8].mxu0 %vm510_vm5, %v1090_v37  ;;  %v1694_v37 = vld [vmem:[%s5467_s11 + $0x48] sm:$0xff] }
 0x6ee   :  { %4085 = vmatpush3.msra.mxu0 %v420_v6  ;;  %v4417_v6 = vpack.c.bf16 %v1694_v37, %v1693_v5 }
 0x6fa   :  { %4588 = vrot.lane.b32.xlu1 %v4915_v58, %s4706_s27 }
 0x772   :  { %v1369_v7 = vpop.xlane.xlu1 %1368 }
 0x776   :  { %v1366_v8 = vpop.xlane.xlu1 %1365 }
 0x777   :  { %4650 = vrcp.f32 %v1366_v8  ;;  %v1696_v8 = vld [vmem:[%s5467_s11 + $0x58] sm:$0xff] }
 0x778   :  { %4652 = vrcp.f32 %v1369_v7  ;;  %v1695_v7 = vld [vmem:[%s5467_s11 + $0x50] sm:$0xff] }
 0x77a   :  { %v4589_v9 = vpop.permute.xlu1 %4588 }
 0x77b   :  { %v4591_v33 = vunpack.i.h.bf16 %v4589_v9  ;;  %v4590_v10 = vunpack.i.l.bf16 %v4589_v9  ;;  %v4421_v9 = vpack.c.bf16 %v1696_v8, %v1695_v7  ;;  %v3721_v7 = vld [vmem:[%s5458_s6 + $0x28] sm:$0xff] }
 0x77d   :  { %v4389_v12 = vpack.c.bf16 %v4591_v33, %v4590_v10  ;;  %v1697_v33 = vld [vmem:[%s5467_s11 + $0x60] sm:$0xff]  ;;  %v1698_v10 = vld [vmem:[%s5467_s11 + $0x68] sm:$0xff] }
 0x77f   :  { %4390 = vmatprep.subr.bf16.mxu0 %v4389_v12 }
 0x781   :  { %v4651_v11 = vpop.eup %4650 }
 0x782   :  { %v4653_v15 = vpop.eup %4652  ;;  %v1372_v58 = vmul.f32 %v4651_v11, %v4647_v2  ;;  %v1691_v2 = vld [vmem:[%s5467_s11 + $0x30] sm:$0xff] }
 0x783   :  { %v1373_v17 = vmul.f32 %v4653_v15, %v4643_v41  ;;  %v1689_v41 = vld [vmem:[%s5467_s11 + $0x20] sm:$0xff]  ;;  %v4413_v4 = vpack.c.bf16 %v1692_v3, %v1691_v2 }
 0x784   :  { %v4409_v56 = vpack.c.bf16 %v1690_v1, %v1689_v41 }
 0x7c0   :  { %v4083_v13 = vpop.f32.mrb[8].mxu0 }
 0x7c1   :  { %v1169_v14 = vpop.f32.mrb[9].mxu0 }
 0x7c2   :  { %4086 = vmatprep.mubr.msk.f32.mxu0 %vm422_vm3, %v1169_v14 }
 0x7c3   :  { %4087 = vmatmul.mubr.msk.f32.vlgmr.msra.gmra.mrb[6].mxu0 %vm422_vm3, %v4083_v13 }
 0x7c4   :  { %4392 = vmatpush3.bf16.msra.mxu0 %v4389_v12  ;;  %4100 = vmatprep.mubr.msk.f32.mxu0 %vm510_vm5, %v1372_v58  ;;  %v4425_v12 = vpack.c.bf16 %v1698_v10, %v1697_v33  ;;  %v3723_v33 = vld [vmem:[%s5458_s6 + $0x38] sm:$0xff] }
 0x7c5   :  { %4103 = vmatprep.subr.mxu0 %v421_v16 }
 0x7c7   :  { %4101 = vmatmul.mubr.msk.f32.vlgmr.msra.gmra.mrb[10].mxu0 %vm510_vm5, %v1373_v17  ;;  %v1581_v17 = vsub.s32 5, %v4875_v34 }
 0x7c8   :  { %4104 = vmatpush3.msra.mxu0 %v421_v16 }
 0x7c9   :  { %4402 = vmatprep.subr.bf16.mxu0 %v4401_v63 }
 0x89a   :  { %v4102_v18 = vpop.f32.mrb[10].mxu0 }
 0x89b   :  { %v1452_v19 = vpop.f32.mrb[11].mxu0 }
 0x89c   :  { %4105 = vmatprep.mubr.msk.f32.mxu0 %vm422_vm3, %v1452_v19  ;;  %v1582_v19 = vrot.slane %v4883_v36, %v1581_v17 }
 0x89d   :  { %4106 = vmatmul.mubr.msk.f32.vlgmr.msra.gmra.mrb[6].mxu0 %vm422_vm3, %v4102_v18  ;;  %v1587_v18 = vsub.s32 6, %v4875_v34 }
 0x89e   :  { %4404 = vmatpush3.bf16.msra.mxu0 %v4401_v63 }
 0x89f   :  { %4406 = vmatprep.subr.bf16.mxu0 %v4405_v0 }
 0x8a2   :  { %4408 = vmatpush3.bf16.msra.mxu0 %v4405_v0 }
 0x8a3   :  { %4410 = vmatprep.subr.bf16.mxu0 %v4409_v56 }
 0x8a6   :  { %4412 = vmatpush3.bf16.msra.mxu0 %v4409_v56 }
 0x8a7   :  { %4414 = vmatprep.subr.bf16.mxu0 %v4413_v4 }
 0x8aa   :  { %4416 = vmatpush3.bf16.msra.mxu0 %v4413_v4 }
 0x8ab   :  { %4418 = vmatprep.subr.bf16.mxu0 %v4417_v6 }
 0x8ae   :  { %4420 = vmatpush3.bf16.msra.mxu0 %v4417_v6  ;;  %v3720_v6 = vld [vmem:[%s5458_s6 + $0x20] sm:$0xff] }
 0x8af   :  { %4422 = vmatprep.subr.bf16.mxu0 %v4421_v9  ;;  %v4433_v8 = vpack.c.bf16 %v3721_v7, %v3720_v6 }
 0x8b1   :  { %4434 = vmatprep.subr.bf16.mxu1 %v4433_v8 }
 0x8b2   :  { %4424 = vmatpush3.bf16.msra.mxu0 %v4421_v9  ;;  %v3722_v9 = vld [vmem:[%s5458_s6 + $0x30] sm:$0xff] }
 0x8b3   :  { %4426 = vmatprep.subr.bf16.mxu0 %v4425_v12  ;;  %v4437_v10 = vpack.c.bf16 %v3723_v33, %v3722_v9 }
 0x8b6   :  { %4428 = vmatpush3.bf16.msra.mxu0 %v4425_v12  ;;  %v3726_v12 = vld [vmem:[%s5459_s7 + $0x20] sm:$0xff] }
 0x970   :  { %v4107_v22 = vpop.f32.mrb[6].mxu0 }
 0x971   :  { %v1549_v23 = vadd.f32 %v4107_v22, %v1547_v21  ;;  %v1533_v26 = vpop.f32.mrb[7].mxu0 }
 0x972   :  { %v1548_v27 = vadd.f32 %v1547_v21, %v1533_v26 }
 0x973   :  { %v1551_v28 = vadd.f32 %v1549_v23, %v4849_v25  ;;  %v1588_v23 = vrot.slane %v4883_v36, %v1587_v18 }
 0x974   :  { %v1550_v29 = vadd.f32 %v1548_v27, %v4847_v24 }
 0x975   :  { %v1555_v30 = vsel %vm170_vm2, %v1551_v28, 0.0 }
 0x976   :  { %1556 = vadd.xlane.f32.xlu1 %v1555_v30  ;;  %v1552_v31 = vsel %vm170_vm2, %v1550_v29, 0.0 }
 0x977   :  { %1553 = vadd.xlane.f32.xlu0 %v1552_v31 }
 0xa03   :  { %v1557_v32 = vpop.xlane.xlu1 %1556 }
 0xa04   :  { %v1560_v38 = vmul.f32 0.03125, %v1557_v32  ;;  %v1554_v39 = vpop.xlane.xlu0 %1553  ;;  %v1699_v32 = vld [vmem:[%s5467_s11 + $0x70] sm:$0xff] }
 0xa05   :  { %v1559_v42 = vmul.f32 0.03125, %v1554_v39 }
 0xa06   :  { %v5039_v43 = vsub.f32 %v1551_v28, %v1560_v38  ;;  %v1700_v38 = vld [vmem:[%s5467_s11 + $0x78] sm:$0xff] }
 0xa07   :  { %v5041_v44 = vsub.f32 %v1550_v29, %v1559_v42  ;;  %v4429_v39 = vpack.c.bf16 %v1700_v38, %v1699_v32  ;;  %v3715_v42 = vld [vmem:[%s5468_s13] ss:$0 sm:$0xff] }
 0xa08   :  { %v1564_v24 = vmul.f32 %v5039_v43, %v5039_v43 }
 0xa09   :  { %v1563_v45 = vmul.f32 %v5041_v44, %v5041_v44  ;;  %4430 = vmatprep.subr.bf16.mxu0 %v4429_v39 }
 0xa0a   :  { %v1568_v47 = vsel %vm170_vm2, %v1564_v24, 0.0  ;;  %4432 = vmatpush3.bf16.msra.mxu0 %v4429_v39  ;;  %v3728_v39 = vld [vmem:[%s5459_s7 + $0x30] sm:$0xff] }
 0xa0b   :  { %v1565_v25 = vsel %vm170_vm2, %v1563_v45, 0.0 }
 0xa0c   :  { %1566 = vadd.xlane.f32.xlu0 %v1565_v25 }
 0xa10   :  { %1569 = vadd.xlane.f32.xlu0 %v1568_v47 }
 0xa99   :  { %v1567_v11 = vpop.xlane.xlu0 %1566 }
 0xa9a   :  { %v1571_v13 = vmul.f32 0.03125, %v1567_v11  ;;  %v3727_v11 = vld [vmem:[%s5459_s7 + $0x28] sm:$0xff] }
 0xa9c   :  { %v1573_v14 = vadd.f32 1e-05, %v1571_v13  ;;  %v4441_v13 = vpack.c.bf16 %v3727_v11, %v3726_v12 }
 0xa9d   :  { %v1570_v15 = vpop.xlane.xlu0 %1569 }
 0xa9e   :  { %4654 = vrsqrt.f32 %v1573_v14  ;;  %v1572_v58 = vmul.f32 0.03125, %v1570_v15 }
 0xaa0   :  { %v1574_v16 = vadd.f32 1e-05, %v1572_v58 }
 0xaa2   :  { %4656 = vrsqrt.f32 %v1574_v16 }
 0xaa8   :  { %v4655_v21 = vpop.eup %4654 }
 0xaa9   :  { %v1577_v22 = vmul.f32 %v4655_v21, %v5041_v44 }
 0xaab   :  { %v1583_v26 = vmul.f32 %v1582_v19, %v1577_v22  ;;  %v1810_v22 = vsub.s32 7, %v4875_v34  ;;  %v3803_v34 = vld [vmem:[%s5472_s16] ss:$0 sm:$0xff] }
 0xaac   :  { %v4657_v27 = vpop.eup %4656 }
 0xaad   :  { %v1578_v28 = vmul.f32 %v4657_v27, %v5039_v43  ;;  %v1589_v29 = vadd.f32 %v1588_v23, %v1583_v26  ;;  %v1811_v26 = vrot.slane %v4883_v36, %v1810_v22 }
 0xaaf   :  { %v1584_v30 = vmul.f32 %v1582_v19, %v1578_v28  ;;  %4116 = vmatprep.mubr.msk.f32.mxu1 %vm170_vm2, %v1589_v29 }
 0xab1   :  { %v1590_v31 = vadd.f32 %v1588_v23, %v1584_v30  ;;  %v161_v23 = vld [vmem:[%s5463_s12 + $0x8] sm:$0xff] }
 0xab3   :  { %4117 = vmatmul.mubr.msk.f32.vlgmr.msra.gmra.mrb[14].mxu1 %vm170_vm2, %v1590_v31 }
 0xab4   :  { %4436 = vmatpush3.bf16.msra.mxu1 %v4433_v8 }
 0xab5   :  { %4438 = vmatprep.subr.bf16.mxu1 %v4437_v10 }
 0xab8   :  { %4440 = vmatpush3.bf16.msra.mxu1 %v4437_v10 }
 0xab9   :  { %4442 = vmatprep.subr.bf16.mxu1 %v4441_v13 }
 0xb86   :  { %v4118_v43 = vpop.f32.mrb[14].mxu1 }
 0xb87   :  { %v1680_v44 = vadd.f32 %v4118_v43, %v3715_v42  ;;  %v1674_v45 = vpop.f32.mrb[15].mxu1 }
 0xb88   :  { %v1675_v25 = vadd.f32 %v3715_v42, %v1674_v45  ;;  %v3729_v42 = vld [vmem:[%s5459_s7 + $0x38] sm:$0xff]  ;;  %v3732_v45 = vld [vmem:[%s5462_s8 + $0x20] sm:$0xff] }
 0xb89   :  { %v1684_v47 = vmax.f32 %v1680_v44, 0.0  ;;  %v4445_v44 = vpack.c.bf16 %v3729_v42, %v3728_v39 }
 0xb8a   :  { %v1683_v24 = vmax.f32 %v1675_v25, 0.0  ;;  %v3733_v25 = vld [vmem:[%s5462_s8 + $0x28] sm:$0xff] }
 0xb8c   :  { %4151 = vmatprep.mubr.f32.mxu0 %v1683_v24  ;;  %v4449_v24 = vpack.c.bf16 %v3733_v25, %v3732_v45 }
 0xb8d   :  { %4152 = vmatmul.mubr.f32.vlgmr.msra.gmra.mrb[12].mxu0 %v1684_v47  ;;  %v3734_v47 = vld [vmem:[%s5462_s8 + $0x30] sm:$0xff] }
 0xc60   :  { %v4153_v52 = vpop.f32.mrb[12].mxu0 }
 0xc61   :  { %v1771_v53 = vpop.f32.mrb[13].mxu0  ;;  %v1777_v54 = vadd.f32 %v4153_v52, %v1704_v51 }
 0xc62   :  { %v1772_v55 = vadd.f32 %v1771_v53, %v1704_v51  ;;  %v3735_v51 = vld [vmem:[%s5462_s8 + $0x38] sm:$0xff]  ;;  %v5195_v53 = vld [vmem:[%s5463_s12 + $0x10] sm:$0xff] }
 0xc63   :  { %v1781_v62 = vadd.f32 %v1777_v54, %v1590_v31  ;;  %v4453_v52 = vpack.c.bf16 %v3735_v51, %v3734_v47  ;;  %v1831_v54 = vrot.slane %v5195_v53, %v4878_v35 }
 0xc64   :  { %v1780_v57 = vadd.f32 %v1772_v55, %v1589_v29  ;;  %v1817_v29 = vrot.slane %v161_v23, %v4878_v35 }
 0xc65   :  { %v1785_v63 = vsel %vm170_vm2, %v1781_v62, 0.0 }
 0xc66   :  { %v1782_v60 = vsel %vm170_vm2, %v1780_v57, 0.0 }
 0xc67   :  { %1783 = vadd.xlane.f32.xlu0 %v1782_v60 }
 0xc6b   :  { %1786 = vadd.xlane.f32.xlu0 %v1785_v63 }
 0xcf4   :  { %v1784_v50 = vpop.xlane.xlu0 %1783 }
 0xcf5   :  { %v1788_v0 = vmul.f32 0.03125, %v1784_v50 }
 0xcf7   :  { %v1790_v41 = vsub.f32 %v1780_v57, %v1788_v0 }
 0xcf8   :  { %v1787_v1 = vpop.xlane.xlu0 %1786 }
 0xcf9   :  { %v1789_v56 = vmul.f32 0.03125, %v1787_v1  ;;  %v1792_v2 = vmul.f32 %v1790_v41, %v1790_v41 }
 0xcfb   :  { %v1791_v3 = vsub.f32 %v1781_v62, %v1789_v56  ;;  %v1794_v4 = vsel %vm170_vm2, %v1792_v2, 0.0  ;;  %v1921_v62 = vrot.slane %v5195_v53, %v258_v40 }
 0xcfc   :  { %1795 = vadd.xlane.f32.xlu0 %v1794_v4 }
 0xcfd   :  { %v1793_v5 = vmul.f32 %v1791_v3, %v1791_v3 }
 0xcff   :  { %v1797_v37 = vsel %vm170_vm2, %v1793_v5, 0.0 }
 0xd00   :  { %1798 = vadd.xlane.f32.xlu1 %v1797_v37 }
 0xd89   :  { %v1796_v14 = vpop.xlane.xlu0 %1795 }
 0xd8a   :  { %v1800_v15 = vmul.f32 0.03125, %v1796_v14 }
 0xd8c   :  { %v1802_v58 = vadd.f32 1e-05, %v1800_v15 }
 0xd8d   :  { %v1799_v16 = vpop.xlane.xlu1 %1798 }
 0xd8e   :  { %4658 = vrsqrt.f32 %v1802_v58  ;;  %v1801_v19 = vmul.f32 0.03125, %v1799_v16 }
 0xd90   :  { %v1803_v21 = vadd.f32 1e-05, %v1801_v19 }
 0xd92   :  { %4660 = vrsqrt.f32 %v1803_v21 }
 0xd98   :  { %v4659_v27 = vpop.eup %4658 }
 0xd99   :  { %v1806_v28 = vmul.f32 %v4659_v27, %v1790_v41 }
 0xd9b   :  { %v1812_v30 = vmul.f32 %v1811_v26, %v1806_v28 }
 0xd9c   :  { %v4661_v31 = vpop.eup %4660 }
 0xd9d   :  { %v1807_v32 = vmul.f32 %v4661_v31, %v1791_v3  ;;  %v5158_v38 = vadd.f32 %v1817_v29, %v1812_v30  ;;  %v2005_v3 = vrot.slane %v5195_v53, %v341_v46 }
 0xd9f   :  { %v1813_v43 = vmul.f32 %v1811_v26, %v1807_v32  ;;  %4162 = vmatprep.mubr.msk.f32.mxu1 %vm170_vm2, %v5158_v38 }
 0xda1   :  { %v5168_v36 = vadd.f32 %v1817_v29, %v1813_v43 }
 0xda3   :  { %4163 = vmatmul.mubr.msk.f32.vlgmr.msra.gmra.mrb[16].mxu1 %vm170_vm2, %v5168_v36 }
 0xda4   :  { %4444 = vmatpush3.bf16.msra.mxu1 %v4441_v13  ;;  %4173 = vmatprep.mubr.msk.f32.mxu1 %vm170_vm2, %v5158_v38 }
 0xda5   :  { %4446 = vmatprep.subr.bf16.mxu1 %v4445_v44 }
 0xda8   :  { %4448 = vmatpush3.bf16.msra.mxu1 %v4445_v44 }
 0xda9   :  { %4450 = vmatprep.subr.bf16.mxu1 %v4449_v24 }
 0xdab   :  { %4174 = vmatmul.mubr.msk.f32.vlgmr.msra.gmra.mrb[18].mxu1 %vm170_vm2, %v5168_v36 }
 0xdac   :  { %4452 = vmatpush3.bf16.msra.mxu1 %v4449_v24  ;;  %4184 = vmatprep.mubr.msk.f32.mxu1 %vm170_vm2, %v5158_v38 }
 0xdad   :  { %4454 = vmatprep.subr.bf16.mxu1 %v4453_v52 }
 0xdb0   :  { %4456 = vmatpush3.bf16.msra.mxu1 %v4453_v52 }
 0xdb3   :  { %4185 = vmatmul.mubr.msk.f32.vlgmr.msra.gmra.mrb[20].mxu1 %vm170_vm2, %v5168_v36 }
 0xe76   :  { %v4164_v55 = vpop.f32.mrb[16].mxu1 }
 0xe77   :  { %v1904_v57 = vpop.f32.mrb[17].mxu1  ;;  %v5208_v63 = vadd.f32 %v4164_v55, %v1831_v54 }
 0xe78   :  { %v5199_v60 = vadd.f32 %v1904_v57, %v1831_v54 }
 0xe7a   :  { %2276 = vrot.lane.b32.xlu1 %v5199_v60, %s4704_s21  ;;  %4191 = vmatprep.mubr.msk.f32.mxu1 %vm422_vm3, %v5199_v60 }
 0xe7e   :  { %v4175_v50 = vpop.f32.mrb[18].mxu1  ;;  %2278 = vrot.lane.b32.xlu1 %v5208_v63, %s4704_s21 }
 0xe7f   :  { %v1994_v0 = vadd.f32 %v4175_v50, %v1921_v62  ;;  %v1988_v41 = vpop.f32.mrb[19].mxu1 }
 0xe80   :  { %v1989_v1 = vadd.f32 %v1988_v41, %v1921_v62 }
 0xe82   :  { %v5212_v56 = vpack.i.bf16 %v1994_v0, %v1989_v1  ;;  %v4457_v2 = vpack.c.bf16 %v1994_v0, %v1989_v1 }
 0xe84   :  { %4593 = vrot.lane.b32.xlu0 %v5212_v56, %s4704_s21  ;;  %4459 = vmatprep.subr.msk.bf16.mxu1 %vm4900_vm4, %v4457_v2 }
 0xe85   :  { %4598 = vrot.lane.b32.xlu1 %v5212_v56, %s4705_s26  ;;  %4462 = vmatpush3.bf16.xpose.msk.msra.mxu1 %vm4900_vm4, %v4457_v2 }
 0xe86   :  { %v4186_v40 = vpop.f32.mrb[20].mxu1 }
 0xe87   :  { %v2078_v4 = vadd.f32 %v4186_v40, %v2005_v3  ;;  %v2072_v5 = vpop.f32.mrb[21].mxu1 }
 0xe88   :  { %v2073_v37 = vadd.f32 %v2072_v5, %v2005_v3  ;;  %2640 = vrot.lane.b32.xlu0 %v5199_v60, %s4705_s26 }
 0xe89   :  { %2642 = vrot.lane.b32.xlu1 %v5208_v63, %s4705_s26 }
 0xe8a   :  { %v4463_v46 = vpack.c.bf16 %v2078_v4, %v2073_v37  ;;  %v5229_v6 = vpack.i.bf16 %v2078_v4, %v2073_v37 }
 0xe8c   :  { %4192 = vmatmul.mubr.msk.f32.vlgmr.msra.gmra.mrb[22].mxu1 %vm422_vm3, %v5208_v63  ;;  %4464 = vmatprep.subr.bf16.mxu0 %v4463_v46 }
 0xe8d   :  { %4466 = vmatpush3.bf16.msra.mxu0 %v4463_v46 }
 0xeec   :  { %v2277_v7 = vpop.permute.xlu1 %2276 }
 0xeed   :  { %4205 = vmatprep.mubr.msk.f32.mxu1 %vm422_vm3, %v2277_v7 }
 0xef0   :  { %v2279_v8 = vpop.permute.xlu1 %2278 }
 0xef6   :  { %v4594_v9 = vpop.permute.xlu0 %4593 }
 0xef7   :  { %v4596_v33 = vunpack.i.h.bf16 %v4594_v9  ;;  %v4595_v10 = vunpack.i.l.bf16 %v4594_v9  ;;  %v4599_v12 = vpop.permute.xlu1 %4598 }
 0xef8   :  { %v4601_v11 = vunpack.i.h.bf16 %v4599_v12  ;;  %v4600_v13 = vunpack.i.l.bf16 %v4599_v12 }
 0xef9   :  { %v4467_v14 = vpack.c.bf16 %v4596_v33, %v4595_v10 }
 0xefa   :  { %v4477_v15 = vpack.c.bf16 %v4601_v11, %v4600_v13  ;;  %v2641_v58 = vpop.permute.xlu0 %2640 }
 0xefb   :  { %4469 = vmatprep.subr.msk.bf16.mxu1 %vm4900_vm4, %v4467_v14  ;;  %v2643_v16 = vpop.permute.xlu1 %2642 }
 0xefc   :  { %4472 = vmatpush3.bf16.xpose.msk.msra.mxu1 %vm4900_vm4, %v4467_v14 }
 0xefd   :  { %4479 = vmatprep.subr.msk.bf16.mxu1 %vm4900_vm4, %v4477_v15 }
 0xf03   :  { %4206 = vmatmul.mubr.msk.f32.vlgmr.msra.gmra.mrb[24].mxu1 %vm422_vm3, %v2279_v8 }
 0xf04   :  { %4482 = vmatpush3.bf16.xpose.msk.msra.mxu1 %vm4900_vm4, %v4477_v15  ;;  %4229 = vmatprep.mubr.msk.f32.mxu1 %vm422_vm3, %v2641_v58 }
 0xf0b   :  { %4230 = vmatmul.mubr.msk.f32.vlgmr.msra.gmra.mrb[26].mxu1 %vm422_vm3, %v2643_v16 }
 0xf5f   :  { %v4193_v19 = vpop.f32.mrb[22].mxu1 }
 0xf60   :  { %v2170_v21 = vadd.f32 %v4193_v19, %v4927_v61  ;;  %v2164_v23 = vpop.f32.mrb[23].mxu1 }
 0xf61   :  { %v2165_v26 = vadd.f32 %v2164_v23, %v4922_v59 }
 0xf62   :  { %v2176_v27 = vsel %vm510_vm5, %v2170_v21, -inf }
 0xf63   :  { %2177 = vmax.xlane.f32.xlu1 %v2176_v27  ;;  %v2173_v28 = vsel %vm510_vm5, %v2165_v26, -inf }
 0xf64   :  { %2174 = vmax.xlane.f32.xlu0 %v2173_v28 }
 0xfd6   :  { %v4207_v29 = vpop.f32.mrb[24].mxu1 }
 0xfd7   :  { %v2358_v30 = vpop.f32.mrb[25].mxu1  ;;  %v2364_v32 = vadd.f32 %v4207_v29, %v4927_v61 }
 0xfd8   :  { %v2359_v31 = vadd.f32 %v2358_v30, %v4922_v59 }
 0xfd9   :  { %v2370_v43 = vsel %vm510_vm5, %v2364_v32, -inf }
 0xfda   :  { %v2367_v39 = vsel %vm510_vm5, %v2359_v31, -inf }
 0xfdb   :  { %2368 = vmax.xlane.f32.xlu0 %v2367_v39 }
 0xfde   :  { %v4231_v42 = vpop.f32.mrb[26].mxu1 }
 0xfdf   :  { %v2722_v44 = vpop.f32.mrb[27].mxu1  ;;  %2371 = vmax.xlane.f32.xlu0 %v2370_v43 }
 0xff0   :  { %v2178_v45 = vpop.xlane.xlu1 %2177 }
 0xff1   :  { %v2180_v25 = vsub.f32 %v2170_v21, %v2178_v45  ;;  %v2175_v24 = vpop.xlane.xlu0 %2174 }
 0xff2   :  { %v2179_v47 = vsub.f32 %v2165_v26, %v2175_v24 }
 0xff3   :  { %v2183_v51 = vmul.f32 1.442695, %v2180_v25 }
 0xff4   :  { %v2181_v52 = vmul.f32 1.442695, %v2179_v47 }
 0xff5   :  { %4662 = vpow2.f32 %v2183_v51 }
 0xff6   :  { %4664 = vpow2.f32 %v2181_v52  ;;  %v3739_v52 = vld [vmem:[%s5465_s9 + $0x28] sm:$0xff] }
 0xfff   :  { %v4663_v54 = vpop.eup %4662 }
0x1000   :  { %v4665_v59 = vpop.eup %4664  ;;  %v2188_v61 = vsel %vm510_vm5, %v4663_v54, 0.0 }
0x1001   :  { %2189 = vadd.xlane.f32.xlu1 %v2188_v61  ;;  %v2185_v55 = vsel %vm510_vm5, %v4665_v59, 0.0 }
0x1002   :  { %2186 = vadd.xlane.f32.xlu0 %v2185_v55 }
0x1068   :  { %v2369_v57 = vpop.xlane.xlu0 %2368 }
0x1069   :  { %v2373_v62 = vsub.f32 %v2359_v31, %v2369_v57 }
0x106b   :  { %v2375_v50 = vmul.f32 1.442695, %v2373_v62 }
0x106c   :  { %v2372_v0 = vpop.xlane.xlu0 %2371 }
0x106d   :  { %4666 = vpow2.f32 %v2375_v50  ;;  %v2374_v41 = vsub.f32 %v2364_v32, %v2372_v0 }
0x106f   :  { %v2377_v1 = vmul.f32 1.442695, %v2374_v41 }
0x1071   :  { %4668 = vpow2.f32 %v2377_v1 }
0x1077   :  { %v4667_v2 = vpop.eup %4666 }
0x1078   :  { %v2379_v3 = vsel %vm510_vm5, %v4667_v2, 0.0 }
0x1079   :  { %2380 = vadd.xlane.f32.xlu0 %v2379_v3 }
0x107b   :  { %v4669_v40 = vpop.eup %4668 }
0x107c   :  { %v2382_v4 = vsel %vm510_vm5, %v4669_v40, 0.0 }
0x107d   :  { %2383 = vadd.xlane.f32.xlu1 %v2382_v4 }
0x108e   :  { %v2190_v5 = vpop.xlane.xlu1 %2189  ;;  %4608 = vrot.lane.b32.xlu1 %v5212_v56, %s4706_s27  ;;  %v5270_v56 = vld [vmem:[%s5464_s3] sm:$0xff] }
0x108f   :  { %4670 = vrcp.f32 %v2190_v5  ;;  %4603 = vrot.lane.b32.xlu0 %v5229_v6, %s4704_s21  ;;  %v2187_v37 = vpop.xlane.xlu0 %2186  ;;  %v2723_v33 = vadd.f32 %v5270_v56, %v2722_v44 }
0x1090   :  { %4672 = vrcp.f32 %v2187_v37 }
0x1092   :  { %2923 = vrot.lane.b32.xlu1 %v5199_v60, %s4706_s27  ;;  %v2731_v60 = vsel %vm510_vm5, %v2723_v33, -inf }
0x1096   :  { %2925 = vrot.lane.b32.xlu1 %v5208_v63, %s4706_s27  ;;  %v5277_v63 = vld [vmem:[%s5464_s3 + $0x8] sm:$0xff] }
0x1097   :  { %v2728_v10 = vadd.f32 %v5277_v63, %v4231_v42 }
0x1099   :  { %v4671_v46 = vpop.eup %4670  ;;  %v2734_v12 = vsel %vm510_vm5, %v2728_v10, -inf }
0x109a   :  { %v4673_v7 = vpop.eup %4672  ;;  %v2194_v9 = vmul.f32 %v4671_v46, %v4663_v54  ;;  %v3738_v54 = vld [vmem:[%s5465_s9 + $0x20] sm:$0xff] }
0x109b   :  { %v2193_v8 = vmul.f32 %v4673_v7, %v4665_v59 }
0x109d   :  { %4198 = vmatprep.mubr.msk.f32.mxu0 %vm510_vm5, %v2193_v8 }
0x109e   :  { %4199 = vmatmul.mubr.msk.f32.vlgmr.msra.gmra.mrb[14].mxu0 %vm510_vm5, %v2194_v9 }
0x10ae   :  { %2732 = vmax.xlane.f32.xlu0 %v2731_v60 }
0x10ba   :  { %2735 = vmax.xlane.f32.xlu1 %v2734_v12 }
0x1106   :  { %v2381_v11 = vpop.xlane.xlu0 %2380 }
0x1107   :  { %4674 = vrcp.f32 %v2381_v11 }
0x110a   :  { %v2384_v13 = vpop.xlane.xlu1 %2383  ;;  %v4604_v14 = vpop.permute.xlu0 %4603 }
0x110b   :  { %4676 = vrcp.f32 %v2384_v13  ;;  %v4606_v15 = vunpack.i.h.bf16 %v4604_v14  ;;  %v4605_v58 = vunpack.i.l.bf16 %v4604_v14 }
0x110d   :  { %v4473_v16 = vpack.c.bf16 %v4606_v15, %v4605_v58 }
0x110e   :  { %v4609_v19 = vpop.permute.xlu1 %4608 }
0x110f   :  { %v4611_v21 = vunpack.i.h.bf16 %v4609_v19  ;;  %v4610_v23 = vunpack.i.l.bf16 %v4609_v19  ;;  %4474 = vmatprep.subr.bf16.mxu0 %v4473_v16 }
0x1110   :  { %4476 = vmatpush3.bf16.msra.mxu0 %v4473_v16 }
0x1111   :  { %v4675_v26 = vpop.eup %4674  ;;  %v4487_v27 = vpack.c.bf16 %v4611_v21, %v4610_v23  ;;  %4215 = vmatprep.subr.mxu0 %v3739_v52 }
0x1112   :  { %v2924_v28 = vpop.permute.xlu1 %2923  ;;  %v2387_v29 = vmul.f32 %v4675_v26, %v4667_v2 }
0x1113   :  { %4489 = vmatprep.subr.msk.bf16.mxu1 %vm4900_vm4, %v4487_v27  ;;  %4248 = vmatprep.mubr.msk.f32.mxu1 %vm422_vm3, %v2924_v28 }
0x1114   :  { %4212 = vmatprep.mubr.msk.f32.mxu0 %vm510_vm5, %v2387_v29  ;;  %4492 = vmatpush3.bf16.xpose.msk.msra.mxu1 %vm4900_vm4, %v4487_v27 }
0x1115   :  { %v4677_v30 = vpop.eup %4676 }
0x1116   :  { %v2388_v31 = vmul.f32 %v4677_v30, %v4669_v40  ;;  %v2926_v32 = vpop.permute.xlu1 %2925 }
0x1118   :  { %4213 = vmatmul.mubr.msk.f32.vlgmr.msra.gmra.mrb[16].mxu0 %vm510_vm5, %v2388_v31  ;;  %v3741_v31 = vld [vmem:[%s5465_s9 + $0x38] sm:$0xff] }
0x1119   :  { %4216 = vmatpush3.msra.mxu0 %v3739_v52 }
0x111a   :  { %4220 = vmatprep.subr.mxu0 %v3738_v54 }
0x111b   :  { %4249 = vmatmul.mubr.msk.f32.vlgmr.msra.gmra.mrb[28].mxu1 %vm422_vm3, %v2926_v32 }
0x113b   :  { %v2733_v39 = vpop.xlane.xlu0 %2732 }
0x113c   :  { %v2737_v42 = vsub.f32 %v2723_v33, %v2733_v39 }
0x113e   :  { %v2739_v45 = vmul.f32 1.442695, %v2737_v42 }
0x1147   :  { %v2736_v43 = vpop.xlane.xlu1 %2735 }
0x1148   :  { %v2738_v44 = vsub.f32 %v2728_v10, %v2736_v43 }
0x114a   :  { %v2741_v25 = vmul.f32 1.442695, %v2738_v44 }
0x114c   :  { %4678 = vpow2.f32 %v2741_v25 }
0x114d   :  { %4680 = vpow2.f32 %v2739_v45  ;;  %v3209_v45 = vrot.slane %v5195_v53, %v1546_v20 }
0x1156   :  { %v4679_v24 = vpop.eup %4678 }
0x1157   :  { %v2746_v47 = vsel %vm510_vm5, %v4679_v24, 0.0  ;;  %v4681_v48 = vpop.eup %4680 }
0x1158   :  { %2747 = vadd.xlane.f32.xlu0 %v2746_v47  ;;  %v2743_v51 = vsel %vm510_vm5, %v4681_v48, 0.0 }
0x115c   :  { %2744 = vadd.xlane.f32.xlu0 %v2743_v51 }
0x1171   :  { %v4200_v59 = vpop.f32.mrb[14].mxu0 }
0x1172   :  { %v2267_v61 = vpop.f32.mrb[15].mxu0  ;;  %4613 = vrot.lane.b32.xlu0 %v5229_v6, %s4705_s26 }
0x11e5   :  { %v2748_v55 = vpop.xlane.xlu0 %2747 }
0x11e9   :  { %v2745_v57 = vpop.xlane.xlu0 %2744 }
0x11ea   :  { %4682 = vrcp.f32 %v2745_v57 }
0x11eb   :  { %4684 = vrcp.f32 %v2748_v55  ;;  %v4214_v62 = vpop.f32.mrb[16].mxu0 }
0x11ec   :  { %v2469_v50 = vpop.f32.mrb[17].mxu0 }
0x11ed   :  { %v4614_v0 = vpop.permute.xlu0 %4613  ;;  %4217 = vmatprep.mubr.msk.f32.mxu0 %vm422_vm3, %v2469_v50 }
0x11ee   :  { %v4616_v41 = vunpack.i.h.bf16 %v4614_v0  ;;  %v4615_v1 = vunpack.i.l.bf16 %v4614_v0  ;;  %4218 = vmatmul.mubr.msk.f32.vlgmr.msra.gmra.mrb[18].mxu0 %vm422_vm3, %v4214_v62  ;;  %v4250_v2 = vpop.f32.mrb[28].mxu1 }
0x11ef   :  { %4222 = vmatprep.mubr.msk.f32.mxu0 %vm422_vm3, %v2267_v61  ;;  %v3005_v3 = vpop.f32.mrb[29].mxu1  ;;  %4221 = vmatpush3.msra.mxu0 %v3738_v54  ;;  %v3011_v5 = vadd.f32 %v5277_v63, %v4250_v2  ;;  %v3775_v2 = vld [vmem:[%s5466_s10 + $0x28] sm:$0xff] }
0x11f0   :  { %v4483_v40 = vpack.c.bf16 %v4616_v41, %v4615_v1  ;;  %v3006_v4 = vadd.f32 %v5270_v56, %v3005_v3  ;;  %v3740_v56 = vld [vmem:[%s5465_s9 + $0x30] sm:$0xff]  ;;  %v3774_v1 = vld [vmem:[%s5466_s10 + $0x20] sm:$0xff] }
0x11f1   :  { %v3017_v9 = vsel %vm510_vm5, %v3011_v5, -inf  ;;  %v4497_v3 = vpack.c.bf16 %v3775_v2, %v3774_v1 }
0x11f2   :  { %4484 = vmatprep.subr.bf16.mxu0 %v4483_v40  ;;  %v3014_v37 = vsel %vm510_vm5, %v3006_v4, -inf }
0x11f3   :  { %3015 = vmax.xlane.f32.xlu1 %v3014_v37  ;;  %4498 = vmatprep.subr.bf16.mxu1 %v4497_v3  ;;  %v3782_v37 = vld [vmem:[%s5467_s11 + $0x80] sm:$0xff] }
0x11f4   :  { %v4683_v46 = vpop.eup %4682  ;;  %4500 = vmatpush3.bf16.msra.mxu1 %v4497_v3 }
0x11f5   :  { %v4685_v7 = vpop.eup %4684  ;;  %v2751_v8 = vmul.f32 %v4683_v46, %v4681_v48  ;;  %v3783_v46 = vld [vmem:[%s5467_s11 + $0x88] sm:$0xff] }
0x11f6   :  { %4223 = vmatmul.mubr.msk.f32.vlgmr.msra.gmra.mrb[18].mxu0 %vm422_vm3, %v4200_v59  ;;  %v2752_v33 = vmul.f32 %v4685_v7, %v4679_v24  ;;  %v3784_v7 = vld [vmem:[%s5467_s11 + $0x90] sm:$0xff] }
0x11f7   :  { %4486 = vmatpush3.bf16.msra.mxu0 %v4483_v40  ;;  %3018 = vmax.xlane.f32.xlu1 %v3017_v9  ;;  %v3776_v40 = vld [vmem:[%s5466_s10 + $0x30] sm:$0xff]  ;;  %v3785_v9 = vld [vmem:[%s5467_s11 + $0x98] sm:$0xff] }
0x11f8   :  { %4236 = vmatprep.mubr.msk.f32.mxu0 %vm510_vm5, %v2751_v8  ;;  %4239 = vmatprep.subr.mxu0 %v3740_v56  ;;  %v4505_v8 = vpack.c.bf16 %v3783_v46, %v3782_v37 }
0x11fa   :  { %4237 = vmatmul.mubr.msk.f32.vlgmr.msra.gmra.mrb[20].mxu0 %vm510_vm5, %v2752_v33  ;;  %v4509_v33 = vpack.c.bf16 %v3785_v9, %v3784_v7 }
0x11fb   :  { %4240 = vmatpush3.msra.mxu0 %v3740_v56  ;;  %v3786_v56 = vld [vmem:[%s5467_s11 + $0xa0] sm:$0xff] }
0x1280   :  { %v3016_v60 = vpop.xlane.xlu1 %3015 }
0x1281   :  { %v3020_v63 = vsub.f32 %v3006_v4, %v3016_v60  ;;  %v3777_v4 = vld [vmem:[%s5466_s10 + $0x38] sm:$0xff]  ;;  %v3787_v60 = vld [vmem:[%s5467_s11 + $0xa8] sm:$0xff] }
0x1283   :  { %v3022_v11 = vmul.f32 1.442695, %v3020_v63  ;;  %v4513_v63 = vpack.c.bf16 %v3787_v60, %v3786_v56  ;;  %v3490_v56 = vld [vmem:[%s5469_s15] sm:$0x3f] }
0x1284   :  { %v3019_v10 = vpop.xlane.xlu1 %3018  ;;  %v3484_v60 = vld [vmem:[%s5470_s14] sm:$0xff] }
0x1285   :  { %v3021_v12 = vsub.f32 %v3011_v5, %v3019_v10  ;;  %v4501_v5 = vpack.c.bf16 %v3777_v4, %v3776_v40  ;;  %v3788_v10 = vld [vmem:[%s5467_s11 + $0xb0] sm:$0xff] }
0x1287   :  { %v3024_v13 = vmul.f32 1.442695, %v3021_v12  ;;  %4502 = vmatprep.subr.bf16.mxu1 %v4501_v5  ;;  %v3789_v12 = vld [vmem:[%s5467_s11 + $0xb8] sm:$0xff] }
0x1288   :  { %4504 = vmatpush3.bf16.msra.mxu1 %v4501_v5 }
0x1289   :  { %4686 = vpow2.f32 %v3024_v13  ;;  %v3790_v13 = vld [vmem:[%s5467_s11 + $0xc0] sm:$0xff]  ;;  %4309 = vmatprep.subr.msk.mxu1 %vm3498_vm6, %v3490_v56 }
0x128a   :  { %4688 = vpow2.f32 %v3022_v11  ;;  %v4517_v11 = vpack.c.bf16 %v3789_v12, %v3788_v10  ;;  %v3488_v10 = vld [vmem:[%s5471_s1] sm:$0xff] }
0x1293   :  { %v4687_v14 = vpop.eup %4686 }
0x1294   :  { %v3029_v15 = vsel %vm510_vm5, %v4687_v14, 0.0  ;;  %v4689_v58 = vpop.eup %4688 }
0x1295   :  { %3030 = vadd.xlane.f32.xlu1 %v3029_v15  ;;  %v3026_v16 = vsel %vm510_vm5, %v4689_v58, 0.0 }
0x1299   :  { %3027 = vadd.xlane.f32.xlu1 %v3026_v16  ;;  %v3793_v16 = vld [vmem:[%s5467_s11 + $0xd8] sm:$0xff] }
0x12aa   :  { %4618 = vrot.lane.b32.xlu1 %v5229_v6, %s4706_s27 }
0x12cd   :  { %v4238_v19 = vpop.f32.mrb[20].mxu0 }
0x12ce   :  { %v2831_v21 = vpop.f32.mrb[21].mxu0 }
0x12cf   :  { %4241 = vmatprep.mubr.msk.f32.mxu0 %vm422_vm3, %v2831_v21  ;;  %v3794_v21 = vld [vmem:[%s5467_s11 + $0xe0] sm:$0xff] }
0x12d0   :  { %4242 = vmatmul.mubr.msk.f32.vlgmr.msra.gmra.mrb[18].mxu0 %vm422_vm3, %v4238_v19 }
0x1322   :  { %v3031_v23 = vpop.xlane.xlu1 %3030 }
0x1323   :  { %4690 = vrcp.f32 %v3031_v23  ;;  %v3795_v23 = vld [vmem:[%s5467_s11 + $0xe8] sm:$0xff] }
0x1326   :  { %v3028_v26 = vpop.xlane.xlu1 %3027 }
0x1327   :  { %4692 = vrcp.f32 %v3028_v26  ;;  %v4529_v26 = vpack.c.bf16 %v3795_v23, %v3794_v21 }
0x132a   :  { %v4619_v27 = vpop.permute.xlu1 %4618 }
0x132b   :  { %v4621_v28 = vunpack.i.h.bf16 %v4619_v27  ;;  %v4620_v29 = vunpack.i.l.bf16 %v4619_v27 }
0x132d   :  { %v4493_v30 = vpack.c.bf16 %v4621_v28, %v4620_v29  ;;  %v4691_v6 = vpop.eup %4690 }
0x132e   :  { %v3035_v42 = vmul.f32 %v4691_v6, %v4687_v14  ;;  %v3791_v14 = vld [vmem:[%s5467_s11 + $0xc8] sm:$0xff] }
0x132f   :  { %4494 = vmatprep.subr.bf16.mxu0 %v4493_v30  ;;  %v4521_v15 = vpack.c.bf16 %v3791_v14, %v3790_v13  ;;  %v3486_v13 = vld [vmem:[%s5470_s14 + $0x10] sm:$0xff]  ;;  %v3487_v14 = vld [vmem:[%s5470_s14 + $0x18] sm:$0xff] }
0x1330   :  { %4496 = vmatpush3.bf16.msra.mxu0 %v4493_v30 }
0x1331   :  { %v4693_v32 = vpop.eup %4692  ;;  %4258 = vmatprep.subr.mxu0 %v3741_v31 }
0x1332   :  { %v3034_v39 = vmul.f32 %v4693_v32, %v4689_v58  ;;  %v3792_v58 = vld [vmem:[%s5467_s11 + $0xd0] sm:$0xff]  ;;  %v3243_v32 = vrot.slane %v5195_v53, %v1581_v17 }
0x1333   :  { %v4525_v19 = vpack.c.bf16 %v3793_v16, %v3792_v58  ;;  %v3796_v17 = vld [vmem:[%s5467_s11 + $0xf0] sm:$0xff] }
0x1334   :  { %4255 = vmatprep.mubr.msk.f32.mxu0 %vm510_vm5, %v3034_v39 }
0x1335   :  { %4256 = vmatmul.mubr.msk.f32.vlgmr.msra.gmra.mrb[22].mxu0 %vm510_vm5, %v3035_v42 }
0x1336   :  { %4259 = vmatpush3.msra.mxu0 %v3741_v31 }
0x1337   :  { %4506 = vmatprep.subr.bf16.mxu0 %v4505_v8 }
0x1408   :  { %v4257_v43 = vpop.f32.mrb[22].mxu0 }
0x1409   :  { %v3114_v44 = vpop.f32.mrb[23].mxu0 }
0x140a   :  { %4260 = vmatprep.mubr.msk.f32.mxu0 %vm422_vm3, %v3114_v44 }
0x140b   :  { %4261 = vmatmul.mubr.msk.f32.vlgmr.msra.gmra.mrb[18].mxu0 %vm422_vm3, %v4257_v43  ;;  %v3249_v43 = vrot.slane %v5195_v53, %v1587_v18 }
0x140c   :  { %4508 = vmatpush3.bf16.msra.mxu0 %v4505_v8 }
0x140d   :  { %4510 = vmatprep.subr.bf16.mxu0 %v4509_v33 }
0x1410   :  { %4512 = vmatpush3.bf16.msra.mxu0 %v4509_v33 }
0x1411   :  { %4514 = vmatprep.subr.bf16.mxu0 %v4513_v63 }
0x1414   :  { %4516 = vmatpush3.bf16.msra.mxu0 %v4513_v63  ;;  %v3485_v63 = vld [vmem:[%s5470_s14 + $0x8] sm:$0xff] }
0x1415   :  { %4518 = vmatprep.subr.bf16.mxu0 %v4517_v11  ;;  %v4537_v12 = vpack.c.bf16 %v3485_v63, %v3484_v60 }
0x1418   :  { %4520 = vmatpush3.bf16.msra.mxu0 %v4517_v11  ;;  %v3489_v11 = vld [vmem:[%s5471_s1 + $0x8] sm:$0xff] }
0x1419   :  { %4522 = vmatprep.subr.bf16.mxu0 %v4521_v15 }
0x141c   :  { %4524 = vmatpush3.bf16.msra.mxu0 %v4521_v15  ;;  %v4541_v15 = vpack.c.bf16 %v3487_v14, %v3486_v13 }
0x141d   :  { %4526 = vmatprep.subr.bf16.mxu0 %v4525_v19 }
0x1420   :  { %4528 = vmatpush3.bf16.msra.mxu0 %v4525_v19 }
0x1421   :  { %4530 = vmatprep.subr.bf16.mxu0 %v4529_v26 }
0x1424   :  { %4532 = vmatpush3.bf16.msra.mxu0 %v4529_v26 }
0x14de   :  { %v4262_v25 = vpop.f32.mrb[18].mxu0 }
0x14df   :  { %v3211_v24 = vadd.f32 %v4262_v25, %v3209_v45  ;;  %v3195_v47 = vpop.f32.mrb[19].mxu0 }
0x14e0   :  { %v3210_v48 = vadd.f32 %v3209_v45, %v3195_v47 }
0x14e1   :  { %v3213_v51 = vadd.f32 %v3211_v24, %v5168_v36 }
0x14e2   :  { %v3212_v52 = vadd.f32 %v3210_v48, %v5158_v38 }
0x14e3   :  { %v3217_v54 = vsel %vm170_vm2, %v3213_v51, 0.0 }
0x14e4   :  { %3218 = vadd.xlane.f32.xlu1 %v3217_v54  ;;  %v3214_v59 = vsel %vm170_vm2, %v3212_v52, 0.0 }
0x14e5   :  { %3215 = vadd.xlane.f32.xlu0 %v3214_v59 }
0x1571   :  { %v3219_v61 = vpop.xlane.xlu1 %3218 }
0x1572   :  { %v3221_v55 = vmul.f32 0.03125, %v3219_v61  ;;  %v3216_v57 = vpop.xlane.xlu0 %3215 }
0x1573   :  { %v3220_v62 = vmul.f32 0.03125, %v3216_v57 }
0x1574   :  { %v5332_v50 = vsub.f32 %v3213_v51, %v3221_v55  ;;  %v3797_v51 = vld [vmem:[%s5467_s11 + $0xf8] sm:$0xff] }
0x1575   :  { %v3222_v20 = vsub.f32 %v3212_v52, %v3220_v62  ;;  %v4533_v18 = vpack.c.bf16 %v3797_v51, %v3796_v17  ;;  %v3779_v52 = vld [vmem:[%s5468_s13 + $0x1] ss:$0 sm:$0xff] }
0x1576   :  { %v3225_v36 = vmul.f32 %v5332_v50, %v5332_v50 }
0x1577   :  { %v3224_v0 = vmul.f32 %v3222_v20, %v3222_v20  ;;  %4534 = vmatprep.subr.bf16.mxu0 %v4533_v18 }
0x1578   :  { %v3229_v38 = vsel %vm170_vm2, %v3225_v36, 0.0  ;;  %4536 = vmatpush3.bf16.msra.mxu0 %v4533_v18 }
0x1579   :  { %v3226_v41 = vsel %vm170_vm2, %v3224_v0, 0.0 }
0x157a   :  { %3227 = vadd.xlane.f32.xlu0 %v3226_v41 }
0x157e   :  { %3230 = vadd.xlane.f32.xlu0 %v3229_v38 }
0x1607   :  { %v3228_v27 = vpop.xlane.xlu0 %3227 }
0x1608   :  { %v3232_v28 = vmul.f32 0.03125, %v3228_v27  ;;  %v3719_v27 = vld [vmem:[%s5463_s12 + $0x18] sm:$0xff] }
0x160a   :  { %v3234_v29 = vadd.f32 1e-05, %v3232_v28  ;;  %v3475_v28 = vrot.slane %v5195_v53, %v1810_v22 }
0x160b   :  { %v3231_v30 = vpop.xlane.xlu0 %3230 }
0x160c   :  { %4694 = vrsqrt.f32 %v3234_v29  ;;  %v3233_v31 = vmul.f32 0.03125, %v3231_v30 }
0x160e   :  { %v3235_v6 = vadd.f32 1e-05, %v3233_v31  ;;  %v3481_v31 = vrot.slane %v3719_v27, %v4878_v35 }
0x1610   :  { %4696 = vrsqrt.f32 %v3235_v6 }
0x1616   :  { %v4695_v39 = vpop.eup %4694 }
0x1617   :  { %v3238_v42 = vmul.f32 %v4695_v39, %v3222_v20 }
0x1619   :  { %v3244_v44 = vmul.f32 %v3243_v32, %v3238_v42 }
0x161a   :  { %v4697_v45 = vpop.eup %4696 }
0x161b   :  { %v3239_v25 = vmul.f32 %v4697_v45, %v5332_v50  ;;  %v3250_v24 = vadd.f32 %v3249_v43, %v3244_v44  ;;  %v3368_v50 = vrot.slane %v5195_v53, %v1703_v49 }
0x161d   :  { %v3245_v47 = vmul.f32 %v3243_v32, %v3239_v25  ;;  %4271 = vmatprep.mubr.msk.f32.mxu1 %vm170_vm2, %v3250_v24 }
0x161f   :  { %v3251_v48 = vadd.f32 %v3249_v43, %v3245_v47 }
0x1621   :  { %4272 = vmatmul.mubr.msk.f32.vlgmr.msra.gmra.mrb[30].mxu1 %vm170_vm2, %v3251_v48 }
0x1622   :  { %4310 = vmatpush3.msk.msra.mxu1 %vm3498_vm6, %v3490_v56  ;;  %4311 = vmatprep.mubr.msk.f32.mxu1 %vm3491_vm7, %v3488_v10 }
0x1623   :  { %4538 = vmatprep.subr.bf16.mxu1 %v4537_v12 }
0x1625   :  { %4312 = vmatmul.mubr.msk.f32.vlgmr.msra.gmra.mrb[32].mxu1 %vm3491_vm7, %v3489_v11 }
0x1626   :  { %4540 = vmatpush3.bf16.msra.mxu1 %v4537_v12 }
0x1627   :  { %4542 = vmatprep.subr.bf16.mxu1 %v4541_v15 }
0x162a   :  { %4544 = vmatpush3.bf16.msra.mxu1 %v4541_v15 }
0x16f4   :  { %v4273_v54 = vpop.f32.mrb[30].mxu1 }
0x16f5   :  { %v3343_v59 = vadd.f32 %v4273_v54, %v3779_v52  ;;  %v3337_v61 = vpop.f32.mrb[31].mxu1 }
0x16f6   :  { %v3338_v55 = vadd.f32 %v3779_v52, %v3337_v61 }
0x16f7   :  { %v3347_v62 = vmax.f32 %v3343_v59, 0.0 }
0x16f8   :  { %v3346_v57 = vmax.f32 %v3338_v55, 0.0 }
0x16fa   :  { %4306 = vmatprep.mubr.f32.mxu0 %v3346_v57 }
0x16fb   :  { %4307 = vmatmul.mubr.f32.vlgmr.msra.gmra.mrb[24].mxu0 %v3347_v62 }
0x17ce   :  { %v4308_v20 = vpop.f32.mrb[24].mxu0 }
0x17cf   :  { %v3435_v0 = vpop.f32.mrb[25].mxu0  ;;  %v3441_v41 = vadd.f32 %v4308_v20, %v3368_v50 }
0x17d0   :  { %v3436_v36 = vadd.f32 %v3435_v0, %v3368_v50 }
0x17d1   :  { %v3445_v2 = vadd.f32 %v3441_v41, %v3251_v48 }
0x17d2   :  { %v3444_v38 = vadd.f32 %v3436_v36, %v3250_v24 }
0x17d3   :  { %v3449_v3 = vsel %vm170_vm2, %v3445_v2, 0.0 }
0x17d4   :  { %v3446_v1 = vsel %vm170_vm2, %v3444_v38, 0.0 }
0x17d5   :  { %3447 = vadd.xlane.f32.xlu0 %v3446_v1 }
0x17d9   :  { %3450 = vadd.xlane.f32.xlu0 %v3449_v3 }
0x1862   :  { %v3448_v40 = vpop.xlane.xlu0 %3447 }
0x1863   :  { %v3452_v4 = vmul.f32 0.03125, %v3448_v40 }
0x1865   :  { %v3454_v5 = vsub.f32 %v3444_v38, %v3452_v4 }
0x1866   :  { %v3451_v37 = vpop.xlane.xlu0 %3450 }
0x1867   :  { %v3453_v46 = vmul.f32 0.03125, %v3451_v37  ;;  %v3456_v7 = vmul.f32 %v3454_v5, %v3454_v5 }
0x1869   :  { %v3455_v8 = vsub.f32 %v3445_v2, %v3453_v46  ;;  %v3458_v49 = vsel %vm170_vm2, %v3456_v7, 0.0 }
0x186a   :  { %3459 = vadd.xlane.f32.xlu0 %v3458_v49 }
0x186b   :  { %v3457_v9 = vmul.f32 %v3455_v8, %v3455_v8 }
0x186d   :  { %v3461_v33 = vsel %vm170_vm2, %v3457_v9, 0.0 }
0x186e   :  { %3462 = vadd.xlane.f32.xlu1 %v3461_v33 }
0x18f7   :  { %v3460_v58 = vpop.xlane.xlu0 %3459 }
0x18f8   :  { %v3464_v16 = vmul.f32 0.03125, %v3460_v58 }
0x18fa   :  { %v3466_v19 = vadd.f32 1e-05, %v3464_v16 }
0x18fb   :  { %v3463_v21 = vpop.xlane.xlu1 %3462 }
0x18fc   :  { %4698 = vrsqrt.f32 %v3466_v19  ;;  %v3465_v23 = vmul.f32 0.03125, %v3463_v21 }
0x18fe   :  { %v3467_v26 = vadd.f32 1e-05, %v3465_v23 }
0x1900   :  { %4700 = vrsqrt.f32 %v3467_v26 }
0x1906   :  { %v4699_v29 = vpop.eup %4698 }
0x1907   :  { %v3470_v30 = vmul.f32 %v4699_v29, %v3454_v5 }
0x1909   :  { %v3476_v6 = vmul.f32 %v3475_v28, %v3470_v30 }
0x190a   :  { %v4701_v32 = vpop.eup %4700 }
0x190b   :  { %v3471_v39 = vmul.f32 %v4701_v32, %v3455_v8  ;;  %v3482_v42 = vadd.f32 %v3481_v31, %v3476_v6 }
0x190d   :  { %v3477_v43 = vmul.f32 %v3475_v28, %v3471_v39  ;;  %4322 = vmatprep.mubr.msk.f32.mxu1 %vm170_vm2, %v3482_v42 }
0x190f   :  { %v3483_v44 = vadd.f32 %v3481_v31, %v3477_v43 }
0x1911   :  { %4323 = vmatmul.mubr.msk.f32.vlgmr.msra.gmra.mrb[32].mxu1 %vm170_vm2, %v3483_v44 }
0x19e4   :  { %v4324_v45 = vpop.f32.mrb[32].mxu1 }
0x19e5   :  { %v3666_v22 = vadd.f32 %v4324_v45, %v3803_v34  ;;  %v3649_v53 = vpop.f32.mrb[33].mxu1 }
0x19e6   :  { %v3665_v25 = vadd.f32 %v3803_v34, %v3649_v53 }
0x19e7   :  { %3668 = vst [vmem:[%s5473_s17 + $0x8] sm:$0xff] %v3666_v22 }
0x19e8   :  { %3667 = vst [vmem:[%s5473_s17] sm:$0xff] %v3665_v25 }

</bundles_post_ra>
